<compile_context>
chip_gen: v7x
topology: tpu7x:2x2x1
jax: 0.10.0
libtpu: 0.0.40
codegen_flags: <defaults>
</compile_context>

<pallas_src>
import functools

import jax
import jax.numpy as jnp
from jax.experimental import pallas as pl
from jax.experimental.pallas import tpu as pltpu

_NEG_BIG = -1e30          # pad-column logit bias (avoids -inf NaN corner cases)
_DEFAULT_TILE_CAP = 4096  # columns per V tile (multiple of 128)


def _round_up(x, m):
    return ((x + m - 1) // m) * m


def _tile_and_pad(v, cap=_DEFAULT_TILE_CAP):
    """Pick a V tile (multiple of 128, <= cap) and the padded vocab size."""
    vt = min(_round_up(v, 128), cap)
    v_pad = _round_up(v, vt)
    return vt, v_pad


def _vmem_limit_bytes():
    try:
        cap = int(pltpu.get_tpu_info().vmem_capacity_bytes)
    except Exception:  # pragma: no cover - conservative fallback (v7x-safe)
        cap = 64 * 1024 * 1024
    return min((cap * 3) // 4, 100 * 1024 * 1024)


def _bn_scale_shift(bn):
    # bn rows: [gamma, beta, running_mean, running_var] (eval-mode statistics)
    gamma, beta, rmean, rvar = bn[0], bn[1], bn[2], bn[3]
    scale = gamma * jax.lax.rsqrt(rvar + 1e-5)
    shift = beta - rmean * scale
    return scale, shift


# ---------------------------------------------------------------------------
# Kernel A (precompute, once per weight set):
#   beta_scaled = softmax(topic @ wordT + col_bias, axis=1) * decoder_bn_scale
# Single pass over V tiles; (K, V_pad) output slab resident in VMEM; raw logits
# stored per tile, online max/sum in scratch, tile-wise normalize epilogue.
# ---------------------------------------------------------------------------
def beta_kernel(topic_ref, wordT_ref, cbias_ref, dscale_ref, beta_ref,
                m_sc, l_sc, *, vt, nvt):
    v = pl.program_id(0)

    @pl.when(v == 0)
    def _():
        m_sc[...] = jnp.full_like(m_sc, -jnp.inf)
        l_sc[...] = jnp.zeros_like(l_sc)

    s = jnp.dot(topic_ref[...], wordT_ref[...],
                preferred_element_type=jnp.float32) + cbias_ref[...]     # (K, vt)

    m_new = jnp.maximum(m_sc[...], jnp.max(s, axis=-1, keepdims=True))
    l_sc[...] = (l_sc[...] * jnp.exp(m_sc[...] - m_new)
                 + jnp.sum(jnp.exp(s - m_new), axis=-1, keepdims=True))
    m_sc[...] = m_new

    start = pl.multiple_of(v * vt, 128)
    beta_ref[:, pl.ds(start, vt)] = s.astype(beta_ref.dtype)            # raw logits

    @pl.when(v == nvt - 1)
    def _():
        inv_l = pl.reciprocal(l_sc[...], approx=False)
        m = m_sc[...]
        for t in range(nvt):                                  # static unrolled epilogue
            off = t * vt
            logits = beta_ref[:, pl.ds(off, vt)].astype(jnp.float32)
            beta_ref[:, pl.ds(off, vt)] = (
                jnp.exp(logits - m) * inv_l * dscale_ref[:, pl.ds(off, vt)]
            ).astype(beta_ref.dtype)


# ---------------------------------------------------------------------------
# Kernel B: encoder MLP + reparameterize + theta softmax.
# V is the reduction axis of the first matmul -> stream (B,Vt)/(Vt,H) tiles.
# Eval BN is already folded into the fused (H, 2K) head.
# ---------------------------------------------------------------------------
def encoder_theta_kernel(bows_ref, w1t_ref, b1_ref, w2t_ref, b2_ref,
                         whead_ref, bhead_ref, eps_ref, theta_ref,
                         acc_sc, norm_sc, *, num_topics):
    v = pl.program_id(0)

    @pl.when(v == 0)
    def _():
        acc_sc[...] = jnp.zeros_like(acc_sc)
        norm_sc[...] = jnp.zeros_like(norm_sc)

    x = bows_ref[...]                                            # (B, vt) f32 (exact counts)
    norm_sc[...] += jnp.sum(jnp.abs(x), axis=-1, keepdims=True)
    acc_sc[...] += jnp.dot(x, w1t_ref[...].astype(jnp.float32),
                           preferred_element_type=jnp.float32)   # (B, H)

    @pl.when(v == pl.num_programs(0) - 1)
    def _():
        # (x / (||x||_1 + 1e-8)) @ W1 == (x @ W1) / (||x||_1 + 1e-8)
        inv = 1.0 / (norm_sc[...] + 1e-8)
        h1 = jnp.maximum(acc_sc[...] * inv + b1_ref[...], 0.0)
        h2 = jnp.maximum(
            jnp.dot(h1, w2t_ref[...], preferred_element_type=jnp.float32)
            + b2_ref[...], 0.0)
        ml = (jnp.dot(h2, whead_ref[...], preferred_element_type=jnp.float32)
              + bhead_ref[...])                                  # (B, 2K)
        mu = ml[:, :num_topics]
        logvar = ml[:, num_topics:]
        z = mu + eps_ref[...] * jnp.exp(0.5 * logvar)
        zmax = jnp.max(z, axis=-1, keepdims=True)
        e = jnp.exp(z - zmax)
        theta_ref[...] = (e * pl.reciprocal(
            jnp.sum(e, axis=-1, keepdims=True), approx=False)).astype(theta_ref.dtype)


# ---------------------------------------------------------------------------
# Kernel C: preds = softmax(theta @ beta_scaled + dec_shift, axis=-1)
# Single pass over V tiles; (B, V_pad) output slab resident in VMEM; raw logits
# stored per tile, online max/sum in scratch, tile-wise normalize epilogue.
# ---------------------------------------------------------------------------
def decode_kernel(theta_ref, beta_ref, shift_ref, preds_ref, m_sc, l_sc, *, vt, nvt):
    v = pl.program_id(0)

    @pl.when(v == 0)
    def _():
        m_sc[...] = jnp.full_like(m_sc, -jnp.inf)
        l_sc[...] = jnp.zeros_like(l_sc)

    dec = (jnp.dot(theta_ref[...], beta_ref[...].astype(jnp.float32),
                   preferred_element_type=jnp.float32)
           + shift_ref[...])                                     # (B, vt)

    m_new = jnp.maximum(m_sc[...], jnp.max(dec, axis=-1, keepdims=True))
    l_sc[...] = (l_sc[...] * jnp.exp(m_sc[...] - m_new)
                 + jnp.sum(jnp.exp(dec - m_new), axis=-1, keepdims=True))
    m_sc[...] = m_new

    start = pl.multiple_of(v * vt, 128)
    preds_ref[:, pl.ds(start, vt)] = dec                         # raw logits (f32)

    @pl.when(v == nvt - 1)
    def _():
        inv_l = pl.reciprocal(l_sc[...], approx=False)
        m = m_sc[...]
        for t in range(nvt):                                     # static unrolled epilogue
            off = t * vt
            logits = preds_ref[:, pl.ds(off, vt)]
            preds_ref[:, pl.ds(off, vt)] = jnp.exp(logits - m) * inv_l


# ---------------------------------------------------------------------------
# Host-side preparation (BN folding, head fusion, padding, dtype casting)
# ---------------------------------------------------------------------------
def prepare_encoder(params, v_pad, weight_dtype=jnp.bfloat16):
    s_mu, sh_mu = _bn_scale_shift(params["bn_mu"])
    s_lv, sh_lv = _bn_scale_shift(params["bn_lv"])
    wmu = params["wmut"] * s_mu[None, :]
    bmu = params["bmu"] * s_mu[None, :] + sh_mu[None, :]
    wlv = params["wlvt"] * s_lv[None, :]
    blv = params["blv"] * s_lv[None, :] + sh_lv[None, :]
    V = params["w1t"].shape[0]
    w1t = jnp.pad(params["w1t"], ((0, v_pad - V), (0, 0))).astype(weight_dtype)
    return {
        "w1t": w1t,                                      # (V_pad, H) - large, streamed
        "b1": params["b1"],
        "w2t": params["w2t"],
        "b2": params["b2"],
        "w_head": jnp.concatenate([wmu, wlv], axis=1),   # (H, 2K)
        "b_head": jnp.concatenate([bmu, blv], axis=1),   # (1, 2K)
    }


def precompute_decoder(params, weight_dtype=jnp.bfloat16, v_tile_cap=_DEFAULT_TILE_CAP):
    """Run once per weight set; cache the result across forward calls."""
    topic = params["topic"].astype(weight_dtype)             # (K, E), pre-cast on host
    wordT = params["wordT"]                                   # (E, V)
    K, E = topic.shape
    V = wordT.shape[1]
    vt, v_pad = _tile_and_pad(V, v_tile_cap)
    nvt = v_pad // vt
    pad = v_pad - V

    s_dec, sh_dec = _bn_scale_shift(params["bn_dec"])
    valid = (jnp.arange(v_pad) < V)
    wordT_p = jnp.pad(wordT, ((0, 0), (0, pad))).astype(weight_dtype)
    col_bias = jnp.where(valid, 0.0, _NEG_BIG).reshape(1, v_pad).astype(jnp.float32)
    dec_scale = jnp.pad(s_dec, (0, pad)).reshape(1, v_pad).astype(jnp.float32)
    dec_shift = jnp.where(valid, jnp.pad(sh_dec, (0, pad)),
                          _NEG_BIG).reshape(1, v_pad).astype(jnp.float32)

    beta_scaled = pl.pallas_call(
        functools.partial(beta_kernel, vt=vt, nvt=nvt),
        out_shape=jax.ShapeDtypeStruct((K, v_pad), weight_dtype),
        grid=(nvt,),
        in_specs=[
            pl.BlockSpec((K, E), lambda v: (0, 0)),         # topic     (resident)
            pl.BlockSpec((E, vt), lambda v: (0, v)),        # wordT     (streamed)
            pl.BlockSpec((1, vt), lambda v: (0, v)),        # col bias  (streamed)
            pl.BlockSpec((1, v_pad), lambda v: (0, 0)),     # BN scale  (resident, tiny)
        ],
        out_specs=pl.BlockSpec((K, v_pad), lambda v: (0, 0)),   # resident slab
        scratch_shapes=[pltpu.VMEM((K, 1), jnp.float32),
                        pltpu.VMEM((K, 1), jnp.float32)],
        compiler_params=pltpu.CompilerParams(
            dimension_semantics=("arbitrary",),
            vmem_limit_bytes=_vmem_limit_bytes()),
    )(topic, wordT_p, col_bias, dec_scale)
    return beta_scaled, dec_shift


def etm_forward(bows, enc, eps_noise, beta_scaled, dec_shift,
                v_tile_cap=_DEFAULT_TILE_CAP):
    B, V = bows.shape
    H = enc["w1t"].shape[1]
    K = eps_noise.shape[1]
    vt, v_pad = _tile_and_pad(V, v_tile_cap)
    assert v_pad == beta_scaled.shape[1] == enc["w1t"].shape[0]
    nvt = v_pad // vt
    bows_p = jnp.pad(bows, ((0, 0), (0, v_pad - V)))
    vmem_limit = _vmem_limit_bytes()

    theta = pl.pallas_call(
        functools.partial(encoder_theta_kernel, num_topics=K),
        out_shape=jax.ShapeDtypeStruct((B, K), jnp.float32),
        grid=(nvt,),
        in_specs=[
            pl.BlockSpec((B, vt), lambda v: (0, v)),        # bows      (streamed)
            pl.BlockSpec((vt, H), lambda v: (v, 0)),        # w1t       (streamed)
            pl.BlockSpec((1, H), lambda v: (0, 0)),         # b1        (resident)
            pl.BlockSpec((H, H), lambda v: (0, 0)),         # w2t       (resident)
            pl.BlockSpec((1, H), lambda v: (0, 0)),         # b2
            pl.BlockSpec((H, 2 * K), lambda v: (0, 0)),     # fused mu|logvar W
            pl.BlockSpec((1, 2 * K), lambda v: (0, 0)),     # fused mu|logvar b
            pl.BlockSpec((B, K), lambda v: (0, 0)),         # eps
        ],
        out_specs=pl.BlockSpec((B, K), lambda v: (0, 0)),
        scratch_shapes=[pltpu.VMEM((B, H), jnp.float32),
                        pltpu.VMEM((B, 1), jnp.float32)],
        compiler_params=pltpu.CompilerParams(
            dimension_semantics=("arbitrary",),
            vmem_limit_bytes=vmem_limit),
    )(bows_p, enc["w1t"], enc["b1"], enc["w2t"], enc["b2"],
      enc["w_head"], enc["b_head"], eps_noise)

    preds_pad = pl.pallas_call(
        functools.partial(decode_kernel, vt=vt, nvt=nvt),
        out_shape=jax.ShapeDtypeStruct((B, v_pad), jnp.float32),
        grid=(nvt,),
        in_specs=[
            pl.BlockSpec((B, K), lambda v: (0, 0)),         # theta     (resident)
            pl.BlockSpec((K, vt), lambda v: (0, v)),        # beta      (streamed, 1x)
            pl.BlockSpec((1, vt), lambda v: (0, v)),        # dec shift (streamed)
        ],
        out_specs=pl.BlockSpec((B, v_pad), lambda v: (0, 0)),   # resident slab
        scratch_shapes=[pltpu.VMEM((B, 1), jnp.float32),
                        pltpu.VMEM((B, 1), jnp.float32)],
        compiler_params=pltpu.CompilerParams(
            dimension_semantics=("arbitrary",),
            vmem_limit_bytes=vmem_limit),
    )(theta, beta_scaled, dec_shift)
    return preds_pad[:, :V]


# ---------------------------------------------------------------------------
# Parameter init (torch-equivalent) + pure-JAX reference
# ---------------------------------------------------------------------------
def init_params(key, vocab_size, hidden_size, embed_size, num_topics):
    ks = jax.random.split(key, 8)

    def xavier(k, shape):
        fan_in, fan_out = shape[1], shape[0]
        limit = (6.0 / (fan_in + fan_out)) ** 0.5
        return jax.random.uniform(k, shape, jnp.float32, -limit, limit)

    def linear(k, in_f, out_f):
        kw, kb = jax.random.split(k)
        limit = 1.0 / (in_f ** 0.5)
        w = jax.random.uniform(kw, (out_f, in_f), jnp.float32, -limit, limit)
        b = jax.random.uniform(kb, (1, out_f), jnp.float32, -limit, limit)
        return w.T, b  # pre-transpose for row-major matmul in kernel

    w1t, b1 = linear(ks[0], vocab_size, hidden_size)
    w2t, b2 = linear(ks[1], hidden_size, hidden_size)
    wmut, bmu = linear(ks[2], hidden_size, num_topics)
    wlvt, blv = linear(ks[3], hidden_size, num_topics)

    word_emb = xavier(ks[4], (vocab_size, embed_size))
    topic_emb = xavier(ks[5], (num_topics, embed_size))

    def bn_params(n):
        # rows: gamma, beta, running_mean, running_var (torch eval defaults)
        return jnp.stack([jnp.ones((n,), jnp.float32),
                          jnp.zeros((n,), jnp.float32),
                          jnp.zeros((n,), jnp.float32),
                          jnp.ones((n,), jnp.float32)], axis=0)

    return {
        "w1t": w1t, "b1": b1,
        "w2t": w2t, "b2": b2,
        "wmut": wmut, "bmu": bmu,
        "wlvt": wlvt, "blv": blv,
        "bn_mu": bn_params(num_topics),
        "bn_lv": bn_params(num_topics),
        "topic": topic_emb,
        "wordT": word_emb.T,
        "bn_dec": bn_params(vocab_size),
    }


def etm_reference(bows, p, eps_noise):
    """Pure-JAX reference (un-folded BN, un-tiled) for correctness checking."""
    def bn(x, q):
        return (x - q[2:3]) * jax.lax.rsqrt(q[3:4] + 1e-5) * q[0:1] + q[1:2]

    x = bows / (jnp.sum(jnp.abs(bows), axis=-1, keepdims=True) + 1e-8)
    h1 = jax.nn.relu(x @ p["w1t"] + p["b1"])
    h2 = jax.nn.relu(h1 @ p["w2t"] + p["b2"])
    mu = bn(h2 @ p["wmut"] + p["bmu"], p["bn_mu"])
    logvar = bn(h2 @ p["wlvt"] + p["blv"], p["bn_lv"])
    z = mu + eps_noise * jnp.exp(0.5 * logvar)
    theta = jax.nn.softmax(z, axis=-1)
    beta = jax.nn.softmax(p["topic"] @ p["wordT"], axis=-1)
    return jax.nn.softmax(bn(theta @ beta, p["bn_dec"]), axis=-1)


if __name__ == "__main__":
    B, V, H, E, K = 8, 256, 128, 128, 128

    key = jax.random.PRNGKey(0)
    k_bow, k_param, k_eps = jax.random.split(key, 3)

    # synthetic bag-of-words counts
    bows = jnp.round(
        10.0 * jax.random.uniform(k_bow, (B, V), jnp.float32)).astype(jnp.float32)
    params = init_params(k_param, V, H, E, K)
    eps_noise = jax.random.normal(k_eps, (B, K), jnp.float32)

    ref = etm_reference(bows, params, eps_noise)

    # --- f32 path (tight check) ---
    beta_f32, dshift_f32 = precompute_decoder(params, jnp.float32)
    enc_f32 = prepare_encoder(params, beta_f32.shape[1], jnp.float32)
    preds = etm_forward(bows, enc_f32, eps_noise, beta_f32, dshift_f32)
    preds = jax.block_until_ready(preds)

    assert preds.shape == (B, V)
    assert jnp.allclose(preds, ref, rtol=1e-4, atol=1e-6), "f32 mismatch vs reference"
    assert jnp.allclose(jnp.sum(preds, axis=-1), 1.0, atol=1e-4)

    # --- default bf16 weight-streaming path (large operands only; loose check) ---
    beta_bf16, dshift_bf16 = precompute_decoder(params)          # bf16 default
    enc_bf16 = prepare_encoder(params, beta_bf16.shape[1])       # bf16 default
    preds16 = etm_forward(bows, enc_bf16, eps_noise, beta_bf16, dshift_bf16)
    preds16 = jax.block_until_ready(preds16)

    assert preds16.shape == (B, V)
    assert float(jnp.max(jnp.abs(preds16 - ref))) < 1e-3, "bf16 mismatch vs reference"

    # --- padded-vocab path (V not a multiple of 128) exercises pad masking ---
    V2 = 300
    k2 = jax.random.PRNGKey(1)
    kb2, kp2, ke2 = jax.random.split(k2, 3)
    bows2 = jnp.round(
        10.0 * jax.random.uniform(kb2, (B, V2), jnp.float32)).astype(jnp.float32)
    params2 = init_params(kp2, V2, H, E, K)
    eps2 = jax.random.normal(ke2, (B, K), jnp.float32)
    ref2 = etm_reference(bows2, params2, eps2)
    beta2, dshift2 = precompute_decoder(params2, jnp.float32)
    enc2 = prepare_encoder(params2, beta2.shape[1], jnp.float32)
    preds2 = jax.block_until_ready(etm_forward(bows2, enc2, eps2, beta2, dshift2))
    assert preds2.shape == (B, V2)
    assert jnp.allclose(preds2, ref2, rtol=1e-4, atol=1e-6), "padded-V mismatch"

    print("KERNEL_OK")
</pallas_src>

<mosaic_0001>
module attributes {stable_mosaic.version = 11 : i64} {
  func.func @beta_kernel(%arg0: i32, %arg1: memref<128x128xf32, #tpu.memory_space<vmem>>, %arg2: memref<128x256xf32, #tpu.memory_space<vmem>>, %arg3: memref<1x256xf32, #tpu.memory_space<vmem>>, %arg4: memref<1x256xf32, #tpu.memory_space<vmem>>, %arg5: memref<128x256xf32, #tpu.memory_space<vmem>>, %arg6: memref<128x1xf32, #tpu.memory_space<vmem>>, %arg7: memref<128x1xf32, #tpu.memory_space<vmem>>) attributes {dimension_semantics = [#tpu.dimension_semantics<arbitrary>], iteration_bounds = array<i64: 1>, scalar_prefetch = 0 : i64, scratch_operands = 2 : i64, tpu.core_type = #tpu.core_type<tc>, window_params = [{pipeline_mode = #tpu.pipeline_mode<synchronous>, transform_indices = @transform_0, window_bounds = array<i64: 128, 128>}, {transform_indices = @transform_1, window_bounds = array<i64: 128, 256>}, {transform_indices = @transform_2, window_bounds = array<i64: 1, 256>}, {pipeline_mode = #tpu.pipeline_mode<synchronous>, transform_indices = @transform_3, window_bounds = array<i64: 1, 256>}, {pipeline_mode = #tpu.pipeline_mode<synchronous>, transform_indices = @transform_4, window_bounds = array<i64: 128, 256>}]} {
    %c0_i32 = arith.constant 0 : i32
    %0 = arith.cmpi eq, %arg0, %c0_i32 : i32
    %1 = arith.extui %0 : i1 to i32
    %c0_i32_0 = arith.constant 0 : i32
    %2 = arith.cmpi ne, %1, %c0_i32_0 : i32
    scf.if %2 {
      %cst_21 = arith.constant 0xFF800000 : f32
      %33 = vector.broadcast %cst_21 : f32 to vector<128x1xf32>
      %c0_22 = arith.constant 0 : index
      %c0_23 = arith.constant 0 : index
      %34 = vector.load %arg6[%c0_22, %c0_23] : memref<128x1xf32, #tpu.memory_space<vmem>>, vector<128x1xf32>
      tpu.vector_store %arg6[%c0_22, %c0_23], %33 {strides = array<i32>} : memref<128x1xf32, #tpu.memory_space<vmem>>, vector<128x1xf32>,
      %cst_24 = arith.constant 0.000000e+00 : f32
      %35 = vector.broadcast %cst_24 : f32 to vector<128x1xf32>
      %c0_25 = arith.constant 0 : index
      %c0_26 = arith.constant 0 : index
      %36 = vector.load %arg7[%c0_25, %c0_26] : memref<128x1xf32, #tpu.memory_space<vmem>>, vector<128x1xf32>
      tpu.vector_store %arg7[%c0_25, %c0_26], %35 {strides = array<i32>} : memref<128x1xf32, #tpu.memory_space<vmem>>, vector<128x1xf32>,
    } else {
    }
    %c0 = arith.constant 0 : index
    %c0_1 = arith.constant 0 : index
    %3 = vector.load %arg1[%c0, %c0_1] : memref<128x128xf32, #tpu.memory_space<vmem>>, vector<128x128xf32>
    %c0_2 = arith.constant 0 : index
    %c0_3 = arith.constant 0 : index
    %4 = vector.load %arg2[%c0_2, %c0_3] : memref<128x256xf32, #tpu.memory_space<vmem>>, vector<128x256xf32>
    %cst = arith.constant dense<0.000000e+00> : vector<128x256xf32>
    %5 = tpu.matmul %3, %4, %cst {dimension_numbers = #tpu.dot_dimension_numbers<[1], [0], [0], [1], [0, 0, 1, 1], [], []>} : vector<128x128xf32>, vector<128x256xf32>, vector<128x256xf32> -> vector<128x256xf32>
    %c0_4 = arith.constant 0 : index
    %c0_5 = arith.constant 0 : index
    %6 = vector.load %arg3[%c0_4, %c0_5] : memref<1x256xf32, #tpu.memory_space<vmem>>, vector<1x256xf32>
    %7 = vector.broadcast %6 : vector<1x256xf32> to vector<128x256xf32>
    %8 = arith.addf %5, %7 : vector<128x256xf32>
    %c0_6 = arith.constant 0 : index
    %c0_7 = arith.constant 0 : index
    %9 = vector.load %arg6[%c0_6, %c0_7] : memref<128x1xf32, #tpu.memory_space<vmem>>, vector<128x1xf32>
    %cst_8 = arith.constant dense<0xFF800000> : vector<128xf32>
    %10 = vector.multi_reduction <maximumf>, %8, %cst_8 [1] : vector<128x256xf32> to vector<128xf32>
    %11 = vector.shape_cast %10 : vector<128xf32> to vector<128x1xf32>
    %12 = arith.maximumf %9, %11 : vector<128x1xf32>
    %c0_9 = arith.constant 0 : index
    %c0_10 = arith.constant 0 : index
    %13 = vector.load %arg7[%c0_9, %c0_10] : memref<128x1xf32, #tpu.memory_space<vmem>>, vector<128x1xf32>
    %c0_11 = arith.constant 0 : index
    %c0_12 = arith.constant 0 : index
    %14 = vector.load %arg6[%c0_11, %c0_12] : memref<128x1xf32, #tpu.memory_space<vmem>>, vector<128x1xf32>
    %15 = arith.subf %14, %12 : vector<128x1xf32>
    %16 = math.exp %15 : vector<128x1xf32>
    %17 = arith.mulf %13, %16 : vector<128x1xf32>
    %18 = vector.broadcast %12 : vector<128x1xf32> to vector<128x256xf32>
    %19 = arith.subf %8, %18 : vector<128x256xf32>
    %20 = math.exp %19 : vector<128x256xf32>
    %cst_13 = arith.constant dense<0.000000e+00> : vector<128xf32>
    %21 = vector.multi_reduction <add>, %20, %cst_13 [1] : vector<128x256xf32> to vector<128xf32>
    %22 = vector.shape_cast %21 : vector<128xf32> to vector<128x1xf32>
    %23 = arith.addf %17, %22 : vector<128x1xf32>
    %c0_14 = arith.constant 0 : index
    %c0_15 = arith.constant 0 : index
    %24 = vector.load %arg7[%c0_14, %c0_15] : memref<128x1xf32, #tpu.memory_space<vmem>>, vector<128x1xf32>
    tpu.vector_store %arg7[%c0_14, %c0_15], %23 {strides = array<i32>} : memref<128x1xf32, #tpu.memory_space<vmem>>, vector<128x1xf32>,
    %c0_16 = arith.constant 0 : index
    %c0_17 = arith.constant 0 : index
    %25 = vector.load %arg6[%c0_16, %c0_17] : memref<128x1xf32, #tpu.memory_space<vmem>>, vector<128x1xf32>
    tpu.vector_store %arg6[%c0_16, %c0_17], %12 {strides = array<i32>} : memref<128x1xf32, #tpu.memory_space<vmem>>, vector<128x1xf32>,
    %c256_i32 = arith.constant 256 : i32
    %26 = arith.muli %arg0, %c256_i32 : i32
    %27 = tpu.assume_multiple %26, 128 : i32
    %c0_18 = arith.constant 0 : index
    %28 = arith.index_cast %27 : i32 to index
    %29 = vector.load %arg5[%c0_18, %28] : memref<128x256xf32, #tpu.memory_space<vmem>>, vector<128x256xf32>
    tpu.vector_store %arg5[%c0_18, %28], %8 {strides = array<i32>} : memref<128x256xf32, #tpu.memory_space<vmem>>, vector<128x256xf32>,
    %c0_i32_19 = arith.constant 0 : i32
    %30 = arith.cmpi eq, %arg0, %c0_i32_19 : i32
    %31 = arith.extui %30 : i1 to i32
    %c0_i32_20 = arith.constant 0 : i32
    %32 = arith.cmpi ne, %31, %c0_i32_20 : i32
    scf.if %32 {
      %c0_21 = arith.constant 0 : index
      %c0_22 = arith.constant 0 : index
      %33 = vector.load %arg7[%c0_21, %c0_22] : memref<128x1xf32, #tpu.memory_space<vmem>>, vector<128x1xf32>
      %34 = tpu.reciprocal %33 : vector<128x1xf32> -> vector<128x1xf32>
      %c0_23 = arith.constant 0 : index
      %c0_24 = arith.constant 0 : index
      %35 = vector.load %arg6[%c0_23, %c0_24] : memref<128x1xf32, #tpu.memory_space<vmem>>, vector<128x1xf32>
      %c0_25 = arith.constant 0 : index
      %c0_26 = arith.constant 0 : index
      %36 = vector.load %arg5[%c0_25, %c0_26] : memref<128x256xf32, #tpu.memory_space<vmem>>, vector<128x256xf32>
      %37 = vector.broadcast %35 : vector<128x1xf32> to vector<128x256xf32>
      %38 = arith.subf %36, %37 : vector<128x256xf32>
      %39 = math.exp %38 : vector<128x256xf32>
      %40 = vector.broadcast %34 : vector<128x1xf32> to vector<128x256xf32>
      %41 = arith.mulf %39, %40 : vector<128x256xf32>
      %c0_27 = arith.constant 0 : index
      %c0_28 = arith.constant 0 : index
      %42 = vector.load %arg4[%c0_27, %c0_28] : memref<1x256xf32, #tpu.memory_space<vmem>>, vector<1x256xf32>
      %43 = vector.broadcast %42 : vector<1x256xf32> to vector<128x256xf32>
      %44 = arith.mulf %41, %43 : vector<128x256xf32>
      %c0_29 = arith.constant 0 : index
      %c0_30 = arith.constant 0 : index
      %45 = vector.load %arg5[%c0_29, %c0_30] : memref<128x256xf32, #tpu.memory_space<vmem>>, vector<128x256xf32>
      tpu.vector_store %arg5[%c0_29, %c0_30], %44 {strides = array<i32>} : memref<128x256xf32, #tpu.memory_space<vmem>>, vector<128x256xf32>,
    } else {
    }
    return
  }
  func.func @transform_0(%arg0: i32) -> (i32, i32) {
    %c0_i32 = arith.constant 0 : i32
    %c0_i32_0 = arith.constant 0 : i32
    %c0_i32_1 = arith.constant 0 : i32
    return %c0_i32, %c0_i32_0 : i32, i32
  }
  func.func @transform_1(%arg0: i32) -> (i32, i32) {
    %c0_i32 = arith.constant 0 : i32
    %c0_i32_0 = arith.constant 0 : i32
    return %c0_i32, %arg0 : i32, i32
  }
  func.func @transform_2(%arg0: i32) -> (i32, i32) {
    %c0_i32 = arith.constant 0 : i32
    %c0_i32_0 = arith.constant 0 : i32
    return %c0_i32, %arg0 : i32, i32
  }
  func.func @transform_3(%arg0: i32) -> (i32, i32) {
    %c0_i32 = arith.constant 0 : i32
    %c0_i32_0 = arith.constant 0 : i32
    %c0_i32_1 = arith.constant 0 : i32
    return %c0_i32, %c0_i32_0 : i32, i32
  }
  func.func @transform_4(%arg0: i32) -> (i32, i32) {
    %c0_i32 = arith.constant 0 : i32
    %c0_i32_0 = arith.constant 0 : i32
    %c0_i32_1 = arith.constant 0 : i32
    return %c0_i32, %c0_i32_0 : i32, i32
  }
}

</mosaic_0001>

<bundles_post_ra>
// kernel: tpu_custom_call.1
= control target key start
LH: loop header
LB: loop body
LE: loop exit
PB: predicated region body
PF: predicated region fallthrough
CT: control target
= control target key end

     0   :  { %9 = vsyncpa [#allocation5], 0  ;;  %s2220_s0 = inlined_call_operand.hbm [shape: f32[128,128], index: 0, kind: input, shape index: {}]   ;;  %s2221_s1 = inlined_call_operand.hbm [shape: f32[128,256], index: 1, kind: input, shape index: {}]   ;;  %s2222_s2 = inlined_call_operand.vmem [shape: f32[1,256], index: 2, kind: input, shape index: {}]   ;;  %s2223_s3 = inlined_call_operand.vmem [shape: f32[1,256], index: 3, kind: input, shape index: {}]   ;;  %s2224_s4 = inlined_call_operand.hbm [shape: f32[128,256], index: 4, kind: output, shape index: {}]  }
   0x1   :  { %10 = vsyncpa [#allocation8], 0 }
   0x2   :  { %11 = vsyncpa [#allocation6], 0  ;;  %s1565_s15 = smov [#allocation4]   ;;  %s1493_s19 = scalar_lea.hbm %s2220_s0, 2048 }
   0x3   :  { %s17_s16 = sshll.u32 %s1565_s15, 4  ;;  %p1494_p0 = scmp.ne.s32.totalorder %s2220_s0, %s1493_s19  ;;  %s18_s16 = int_to_ptr.vmem [resolvable:$true] %s17_s16 }
   0x4   :  { %p1497_p1 = scmp.lt.u32.totalorder %s1493_s19, %s2220_s0 }
   0x6   :  { %p1499_p2 = pnand %p1497_p1, %p1494_p0 }
   0x8   :  { %1502 = shalt.err (!%p1499_p2)
}
   0x9   :  { %s1503_s24 = scalar_lea.vmem %s18_s16, 2048  ;;  %p1508_p4 = scmp.lt.s32.totalorder %s18_s16, %s18_s16 }
   0xa   :  { %p1504_p3 = scmp.ne.s32.totalorder %s18_s16, %s1503_s24  ;;  %p1509_p5 = scmp.lt.s32.totalorder %s1503_s24, %s1503_s24 }
   0xc   :  { %p1510_p6 = por %p1509_p5, %p1508_p4 }
   0xe   :  { %p1511_p7 = pnand %p1510_p6, %p1504_p3 }
  0x10   :  { %1514 = shalt.err (!%p1511_p7)
}
  0x11   :  { %s1566_s25 = smov 128   ;;  %s1567_s26 = smov 8  }
  0x12   :  { %23 = dma.hbm_to_vmem [thread:$0]  %s2220_s0, 2048, %s18_s16, [#allocation5], %s1566_s25, %s1566_s25, %s1567_s26  }
  0x13   :  { %s1568_s29 = smov [#allocation7]   ;;  %s1515_s7 = scalar_lea.hbm %s2221_s1, 4096 }
  0x14   :  { %s29_s30 = sshll.u32 %s1568_s29, 4  ;;  %p1516_p8 = scmp.ne.s32.totalorder %s2221_s1, %s1515_s7  ;;  %s30_s30 = int_to_ptr.vmem [resolvable:$true] %s29_s30 }
  0x15   :  { %p1519_p9 = scmp.lt.u32.totalorder %s1515_s7, %s2221_s1 }
  0x17   :  { %p1521_p10 = pnand %p1519_p9, %p1516_p8 }
  0x19   :  { %1524 = shalt.err (!%p1521_p10)
}
  0x1a   :  { %s1525_s12 = scalar_lea.vmem %s30_s30, 4096  ;;  %p1530_p12 = scmp.lt.s32.totalorder %s30_s30, %s30_s30 }
  0x1b   :  { %p1526_p11 = scmp.ne.s32.totalorder %s30_s30, %s1525_s12  ;;  %p1531_p13 = scmp.lt.s32.totalorder %s1525_s12, %s1525_s12 }
  0x1d   :  { %p1532_p0 = por %p1531_p13, %p1530_p12 }
  0x1f   :  { %p1533_p1 = pnand %p1532_p0, %p1526_p11 }
  0x21   :  { %1536 = shalt.err (!%p1533_p1)
}
  0x22   :  { %s1569_s0 = smov 256   ;;  %s1570_s13 = smov 16  }
  0x23   :  { %35 = dma.hbm_to_vmem [thread:$0]  %s2221_s1, 4096, %s30_s30, [#allocation8], %s1569_s0, %s1569_s0, %s1570_s13  }
  0x24   :  { %1559 = dma.done.wait [#allocation5], 2048  }
  0x25   :  { %1560 = vsyncadd [#allocation5], 4294965248 }
  0x26   :  { %1561 = dma.done.wait [#allocation8], 4096  }
  0x27   :  { %1562 = vsyncadd [#allocation8], 4294963200  ;;  %v1571_v0 = vmov 0.0   ;;  %v100_v1 = vld [vmem:[#allocation7 + $0x8] sm:$0xff]  ;;  %v102_v2 = vld [vmem:[#allocation7 + $0x18] sm:$0xff]  ;;  %vm50_vm0 = vcmask 7168  }
  0x28   :  { %207 = vmatprep.mubr.f32.mxu0 %v1571_v0  ;;  %255 = vmatprep.mubr.f32.mxu1 %v1571_v0  ;;  %v99_v3 = vld [vmem:[#allocation7] sm:$0xff]  ;;  %v1241_v4 = vpack.c.bf16 %v102_v2, %v100_v1  ;;  %v101_v5 = vld [vmem:[#allocation7 + $0x10] sm:$0xff]  ;;  %v104_v6 = vld [vmem:[#allocation7 + $0x28] sm:$0xff]  ;;  %v1572_v2 = vmov -inf   ;;  %67 = vst.msk [vmem:[#allocation3] sm:$0xff] %vm50_vm0, %v1571_v0 }
  0x29   :  { %v106_v7 = vld [vmem:[#allocation7 + $0x38] sm:$0xff]  ;;  %v1243_v8 = vpack.c.bf16 %v101_v5, %v99_v3  ;;  %v103_v10 = vld [vmem:[#allocation7 + $0x20] sm:$0xff]  ;;  %v105_v11 = vld [vmem:[#allocation7 + $0x30] sm:$0xff]  ;;  %51 = vst.msk [vmem:[#allocation2] sm:$0xff] %vm50_vm0, %v1572_v2  ;;  %v133_v3 = vlaneseq }
  0x2a   :  { %v1245_v9 = vpack.c.bf16 %v106_v7, %v104_v6  ;;  %v108_v12 = vld [vmem:[#allocation7 + $0x48] sm:$0xff]  ;;  %1242 = vmatprep.subr.bf16.mxu0 %v1241_v4  ;;  %1273 = vmatprep.subr.bf16.mxu1 %v1241_v4  ;;  %v110_v13 = vld [vmem:[#allocation7 + $0x58] sm:$0xff]  ;;  %v1247_v14 = vpack.c.bf16 %v105_v11, %v103_v10  ;;  %v107_v16 = vld [vmem:[#allocation7 + $0x40] sm:$0xff]  ;;  %52 = vst.msk [vmem:[#allocation2 + $0x8] sm:$0xff] %vm50_vm0, %v1572_v2 }
  0x2b   :  { %1244 = vmatpush1.bf16.msra.mxu0 %v1243_v8  ;;  %1281 = vmatpush1.bf16.msra.mxu1 %v1243_v8  ;;  %v1249_v15 = vpack.c.bf16 %v110_v13, %v108_v12  ;;  %v109_v17 = vld [vmem:[#allocation7 + $0x50] sm:$0xff]  ;;  %v112_v18 = vld [vmem:[#allocation7 + $0x68] sm:$0xff]  ;;  %v114_v19 = vld [vmem:[#allocation7 + $0x78] sm:$0xff]  ;;  %53 = vst.msk [vmem:[#allocation2 + $0x10] sm:$0xff] %vm50_vm0, %v1572_v2  ;;  %v1691_v4 = vshrl.u32 %v133_v3, 7 }
  0x2c   :  { %1246 = vmatprep.subr.bf16.mxu0 %v1245_v9  ;;  %1274 = vmatprep.subr.bf16.mxu1 %v1245_v9  ;;  %v1251_v20 = vpack.c.bf16 %v109_v17, %v107_v16  ;;  %v1253_v21 = vpack.c.bf16 %v114_v19, %v112_v18  ;;  %v111_v22 = vld [vmem:[#allocation7 + $0x60] sm:$0xff]  ;;  %v113_v23 = vld [vmem:[#allocation7 + $0x70] sm:$0xff]  ;;  %v116_v24 = vld [vmem:[#allocation7 + $0x88] sm:$0xff]  ;;  %54 = vst.msk [vmem:[#allocation2 + $0x18] sm:$0xff] %vm50_vm0, %v1572_v2 }
  0x2d   :  { %v118_v25 = vld [vmem:[#allocation7 + $0x98] sm:$0xff]  ;;  %v1255_v26 = vpack.c.bf16 %v113_v23, %v111_v22  ;;  %v115_v28 = vld [vmem:[#allocation7 + $0x80] sm:$0xff]  ;;  %v117_v29 = vld [vmem:[#allocation7 + $0x90] sm:$0xff]  ;;  %55 = vst.msk [vmem:[#allocation2 + $0x20] sm:$0xff] %vm50_vm0, %v1572_v2  ;;  %v2226_v5 = vsub.s32 0, %v1691_v4  ;;  %v2225_v7 = vsub.s32 1, %v1691_v4 }
  0x2e   :  { %v1257_v27 = vpack.c.bf16 %v118_v25, %v116_v24  ;;  %v120_v30 = vld [vmem:[#allocation7 + $0xa8] sm:$0xff]  ;;  %v122_v31 = vld [vmem:[#allocation7 + $0xb8] sm:$0xff]  ;;  %v1259_v32 = vpack.c.bf16 %v117_v29, %v115_v28  ;;  %v119_v34 = vld [vmem:[#allocation7 + $0xa0] sm:$0xff]  ;;  %56 = vst.msk [vmem:[#allocation2 + $0x28] sm:$0xff] %vm50_vm0, %v1572_v2 }
  0x2f   :  { %1248 = vmatpush1.bf16.msra.mxu0 %v1247_v14  ;;  %1282 = vmatpush1.bf16.msra.mxu1 %v1247_v14  ;;  %v1261_v33 = vpack.c.bf16 %v122_v31, %v120_v30  ;;  %v121_v35 = vld [vmem:[#allocation7 + $0xb0] sm:$0xff]  ;;  %v124_v36 = vld [vmem:[#allocation7 + $0xc8] sm:$0xff]  ;;  %v126_v37 = vld [vmem:[#allocation7 + $0xd8] sm:$0xff]  ;;  %57 = vst.msk [vmem:[#allocation2 + $0x30] sm:$0xff] %vm50_vm0, %v1572_v2 }
  0x30   :  { %1250 = vmatprep.subr.bf16.mxu0 %v1249_v15  ;;  %1275 = vmatprep.subr.bf16.mxu1 %v1249_v15  ;;  %v1263_v38 = vpack.c.bf16 %v121_v35, %v119_v34  ;;  %v1265_v39 = vpack.c.bf16 %v126_v37, %v124_v36  ;;  %v123_v40 = vld [vmem:[#allocation7 + $0xc0] sm:$0xff]  ;;  %v125_v41 = vld [vmem:[#allocation7 + $0xd0] sm:$0xff]  ;;  %v128_v42 = vld [vmem:[#allocation7 + $0xe8] sm:$0xff]  ;;  %58 = vst.msk [vmem:[#allocation2 + $0x38] sm:$0xff] %vm50_vm0, %v1572_v2 }
  0x31   :  { %v130_v43 = vld [vmem:[#allocation7 + $0xf8] sm:$0xff]  ;;  %v1267_v44 = vpack.c.bf16 %v125_v41, %v123_v40  ;;  %v127_v46 = vld [vmem:[#allocation7 + $0xe0] sm:$0xff]  ;;  %v129_v47 = vld [vmem:[#allocation7 + $0xf0] sm:$0xff]  ;;  %59 = vst.msk [vmem:[#allocation2 + $0x40] sm:$0xff] %vm50_vm0, %v1572_v2 }
  0x32   :  { %v1269_v45 = vpack.c.bf16 %v130_v43, %v128_v42  ;;  %v1271_v48 = vpack.c.bf16 %v129_v47, %v127_v46  ;;  %v83_v49 = vld [vmem:[#allocation4] sm:$0xff]  ;;  %v84_v51 = vld [vmem:[#allocation4 + $0x8] sm:$0xff]  ;;  %v85_v53 = vld [vmem:[#allocation4 + $0x10] sm:$0xff]  ;;  %60 = vst.msk [vmem:[#allocation2 + $0x48] sm:$0xff] %vm50_vm0, %v1572_v2 }
  0x33   :  { %1252 = vmatpush1.bf16.msra.mxu0 %v1251_v20  ;;  %1283 = vmatpush1.bf16.msra.mxu1 %v1251_v20  ;;  %v91_v50 = vld [vmem:[#allocation4 + $0x40] sm:$0xff]  ;;  %v92_v52 = vld [vmem:[#allocation4 + $0x48] sm:$0xff]  ;;  %v93_v54 = vld [vmem:[#allocation4 + $0x50] sm:$0xff]  ;;  %61 = vst.msk [vmem:[#allocation2 + $0x50] sm:$0xff] %vm50_vm0, %v1572_v2 }
  0x34   :  { %1254 = vmatprep.subr.bf16.mxu0 %v1253_v21  ;;  %1276 = vmatprep.subr.bf16.mxu1 %v1253_v21  ;;  %v86_v55 = vld [vmem:[#allocation4 + $0x18] sm:$0xff]  ;;  %v87_v57 = vld [vmem:[#allocation4 + $0x20] sm:$0xff]  ;;  %v88_v59 = vld [vmem:[#allocation4 + $0x28] sm:$0xff]  ;;  %62 = vst.msk [vmem:[#allocation2 + $0x58] sm:$0xff] %vm50_vm0, %v1572_v2 }
  0x35   :  { %v94_v56 = vld [vmem:[#allocation4 + $0x58] sm:$0xff]  ;;  %v95_v58 = vld [vmem:[#allocation4 + $0x60] sm:$0xff]  ;;  %v96_v60 = vld [vmem:[#allocation4 + $0x68] sm:$0xff]  ;;  %63 = vst.msk [vmem:[#allocation2 + $0x60] sm:$0xff] %vm50_vm0, %v1572_v2 }
  0x36   :  { %v89_v61 = vld [vmem:[#allocation4 + $0x30] sm:$0xff]  ;;  %v90_v63 = vld [vmem:[#allocation4 + $0x38] sm:$0xff]  ;;  %64 = vst.msk [vmem:[#allocation2 + $0x68] sm:$0xff] %vm50_vm0, %v1572_v2  ;;  %65 = vst.msk [vmem:[#allocation2 + $0x70] sm:$0xff] %vm50_vm0, %v1572_v2 }
  0x37   :  { %1256 = vmatpush1.bf16.msra.mxu0 %v1255_v26  ;;  %1284 = vmatpush1.bf16.msra.mxu1 %v1255_v26  ;;  %v97_v62 = vld [vmem:[#allocation4 + $0x70] sm:$0xff]  ;;  %v98_v1 = vld [vmem:[#allocation4 + $0x78] sm:$0xff]  ;;  %66 = vst.msk [vmem:[#allocation2 + $0x78] sm:$0xff] %vm50_vm0, %v1572_v2  ;;  %68 = vst.msk [vmem:[#allocation3 + $0x8] sm:$0xff] %vm50_vm0, %v1571_v0 }
  0x38   :  { %1258 = vmatprep.subr.bf16.mxu0 %v1257_v27  ;;  %1277 = vmatprep.subr.bf16.mxu1 %v1257_v27  ;;  %69 = vst.msk [vmem:[#allocation3 + $0x10] sm:$0xff] %vm50_vm0, %v1571_v0  ;;  %70 = vst.msk [vmem:[#allocation3 + $0x18] sm:$0xff] %vm50_vm0, %v1571_v0  ;;  %v131_v6 = vld [vmem:[%s2222_s2] sm:$0x3] }
  0x39   :  { %71 = vst.msk [vmem:[#allocation3 + $0x20] sm:$0xff] %vm50_vm0, %v1571_v0  ;;  %72 = vst.msk [vmem:[#allocation3 + $0x28] sm:$0xff] %vm50_vm0, %v1571_v0  ;;  %v1700_v8 = vrot.slane %v131_v6, %v2226_v5  ;;  %v1704_v9 = vrot.slane %v131_v6, %v2225_v7 }
  0x3a   :  { %73 = vst.msk [vmem:[#allocation3 + $0x30] sm:$0xff] %vm50_vm0, %v1571_v0  ;;  %74 = vst.msk [vmem:[#allocation3 + $0x38] sm:$0xff] %vm50_vm0, %v1571_v0 }
  0x3b   :  { %1260 = vmatpush1.bf16.msra.mxu0 %v1259_v32  ;;  %1285 = vmatpush1.bf16.msra.mxu1 %v1259_v32  ;;  %75 = vst.msk [vmem:[#allocation3 + $0x40] sm:$0xff] %vm50_vm0, %v1571_v0  ;;  %76 = vst.msk [vmem:[#allocation3 + $0x48] sm:$0xff] %vm50_vm0, %v1571_v0 }
  0x3c   :  { %1262 = vmatprep.subr.bf16.mxu0 %v1261_v33  ;;  %1278 = vmatprep.subr.bf16.mxu1 %v1261_v33  ;;  %77 = vst.msk [vmem:[#allocation3 + $0x50] sm:$0xff] %vm50_vm0, %v1571_v0  ;;  %78 = vst.msk [vmem:[#allocation3 + $0x58] sm:$0xff] %vm50_vm0, %v1571_v0 }
  0x3d   :  { %79 = vst.msk [vmem:[#allocation3 + $0x60] sm:$0xff] %vm50_vm0, %v1571_v0  ;;  %80 = vst.msk [vmem:[#allocation3 + $0x68] sm:$0xff] %vm50_vm0, %v1571_v0 }
  0x3e   :  { %81 = vst.msk [vmem:[#allocation3 + $0x70] sm:$0xff] %vm50_vm0, %v1571_v0  ;;  %82 = vst.msk [vmem:[#allocation3 + $0x78] sm:$0xff] %vm50_vm0, %v1571_v0 }
  0x3f   :  { %1264 = vmatpush1.bf16.msra.mxu0 %v1263_v38  ;;  %1286 = vmatpush1.bf16.msra.mxu1 %v1263_v38  ;;  %2244 = vst [vmem:[#allocation13_spill] sm:$0xff] %v1691_v4 }
  0x40   :  { %1266 = vmatprep.subr.bf16.mxu0 %v1265_v39  ;;  %1279 = vmatprep.subr.bf16.mxu1 %v1265_v39 }
  0x43   :  { %1268 = vmatpush1.bf16.msra.mxu0 %v1267_v44  ;;  %1287 = vmatpush1.bf16.msra.mxu1 %v1267_v44 }
  0x44   :  { %1270 = vmatprep.subr.bf16.mxu0 %v1269_v45  ;;  %1280 = vmatprep.subr.bf16.mxu1 %v1269_v45 }
  0x47   :  { %1272 = vmatpush1.bf16.msra.mxu0 %v1271_v48  ;;  %1288 = vmatpush1.bf16.msra.mxu1 %v1271_v48 }
  0x4a   :  { %208 = vmatmul.mubr.f32.vlgmr.msra.gmra.mrb[0].mxu0 %v83_v49  ;;  %256 = vmatmul.mubr.f32.vlgmr.msra.gmra.mrb[0].mxu1 %v91_v50 }
  0x4b   :  { %213 = vmatprep.mubr.f32.mxu0 %v1571_v0  ;;  %261 = vmatprep.mubr.f32.mxu1 %v1571_v0 }
  0x4e   :  { %214 = vmatmul.mubr.f32.gmra.mrb[2].mxu0 %v84_v51  ;;  %262 = vmatmul.mubr.f32.gmra.mrb[2].mxu1 %v92_v52 }
  0x4f   :  { %219 = vmatprep.mubr.f32.mxu0 %v1571_v0  ;;  %267 = vmatprep.mubr.f32.mxu1 %v1571_v0 }
  0x52   :  { %220 = vmatmul.mubr.f32.gmra.mrb[4].mxu0 %v85_v53  ;;  %268 = vmatmul.mubr.f32.gmra.mrb[4].mxu1 %v93_v54 }
  0x53   :  { %225 = vmatprep.mubr.f32.mxu0 %v1571_v0  ;;  %273 = vmatprep.mubr.f32.mxu1 %v1571_v0 }
  0x56   :  { %226 = vmatmul.mubr.f32.gmra.mrb[6].mxu0 %v86_v55  ;;  %274 = vmatmul.mubr.f32.gmra.mrb[6].mxu1 %v94_v56 }
  0x57   :  { %231 = vmatprep.mubr.f32.mxu0 %v1571_v0  ;;  %279 = vmatprep.mubr.f32.mxu1 %v1571_v0 }
  0x5a   :  { %232 = vmatmul.mubr.f32.gmra.mrb[8].mxu0 %v87_v57  ;;  %280 = vmatmul.mubr.f32.gmra.mrb[8].mxu1 %v95_v58 }
  0x5b   :  { %237 = vmatprep.mubr.f32.mxu0 %v1571_v0  ;;  %285 = vmatprep.mubr.f32.mxu1 %v1571_v0 }
  0x5e   :  { %238 = vmatmul.mubr.f32.gmra.mrb[10].mxu0 %v88_v59  ;;  %286 = vmatmul.mubr.f32.gmra.mrb[10].mxu1 %v96_v60 }
  0x5f   :  { %243 = vmatprep.mubr.f32.mxu0 %v1571_v0  ;;  %291 = vmatprep.mubr.f32.mxu1 %v1571_v0 }
  0x62   :  { %244 = vmatmul.mubr.f32.gmra.mrb[12].mxu0 %v89_v61  ;;  %292 = vmatmul.mubr.f32.gmra.mrb[12].mxu1 %v97_v62 }
  0x63   :  { %249 = vmatprep.mubr.f32.mxu0 %v1571_v0  ;;  %297 = vmatprep.mubr.f32.mxu1 %v1571_v0 }
  0x66   :  { %250 = vmatmul.mubr.f32.gmra.mrb[14].mxu0 %v90_v63  ;;  %298 = vmatmul.mubr.f32.gmra.mrb[14].mxu1 %v98_v1  ;;  %v1573_v1 = vmov 0  }
  0x67   :  { %1299 = vset.pattern.permute.xlu0 %v1573_v1  ;;  %1300 = vset.pattern.permute.xlu1 %v1573_v1 }
 0x11d   :  { %v209_v0 = vpop.f32.mrb[0].mxu0  ;;  %v257_v10 = vpop.f32.mrb[0].mxu1 }
 0x11e   :  { %v1707_v11 = vadd.f32 %v209_v0, %v1700_v8  ;;  %v211_v12 = vpop.f32.mrb[1].mxu0  ;;  %v1710_v13 = vadd.f32 %v257_v10, %v1700_v8  ;;  %v259_v14 = vpop.f32.mrb[1].mxu1 }
 0x11f   :  { %v1713_v15 = vadd.f32 %v211_v12, %v1704_v9  ;;  %v1716_v16 = vadd.f32 %v259_v14, %v1704_v9 }
 0x120   :  { %742 = vst [vmem:[#allocation9] sm:$0xff] %v1707_v11  ;;  %758 = vst [vmem:[#allocation9 + $0x80] sm:$0xff] %v1710_v13 }
 0x121   :  { %743 = vst [vmem:[#allocation9 + $0x8] sm:$0xff] %v1713_v15  ;;  %759 = vst [vmem:[#allocation9 + $0x88] sm:$0xff] %v1716_v16  ;;  %v263_v17 = vpop.f32.mrb[2].mxu1  ;;  %v215_v18 = vpop.f32.mrb[2].mxu0  ;;  %v320_v19 = vmax.f32 %v1707_v11, %v1713_v15  ;;  %v344_v26 = vmax.f32 %v1710_v13, %v1716_v16 }
 0x122   :  { %v1725_v20 = vadd.f32 %v263_v17, %v1700_v8  ;;  %v265_v21 = vpop.f32.mrb[3].mxu1  ;;  %v1728_v22 = vadd.f32 %v215_v18, %v1700_v8  ;;  %v217_v23 = vpop.f32.mrb[3].mxu0 }
 0x123   :  { %v1731_v24 = vadd.f32 %v265_v21, %v1704_v9  ;;  %321 = vmax.xlane.f32.xlu0 %v320_v19  ;;  %v1734_v25 = vadd.f32 %v217_v23, %v1704_v9 }
 0x124   :  { %760 = vst [vmem:[#allocation9 + $0x90] sm:$0xff] %v1725_v20  ;;  %744 = vst [vmem:[#allocation9 + $0x10] sm:$0xff] %v1728_v22 }
 0x125   :  { %761 = vst [vmem:[#allocation9 + $0x98] sm:$0xff] %v1731_v24  ;;  %745 = vst [vmem:[#allocation9 + $0x18] sm:$0xff] %v1734_v25  ;;  %v221_v27 = vpop.f32.mrb[4].mxu0  ;;  %v347_v28 = vmax.f32 %v1725_v20, %v1731_v24  ;;  %v269_v29 = vpop.f32.mrb[4].mxu1  ;;  %v323_v35 = vmax.f32 %v1728_v22, %v1734_v25 }
 0x126   :  { %v1745_v30 = vadd.f32 %v221_v27, %v1700_v8  ;;  %v223_v31 = vpop.f32.mrb[5].mxu0  ;;  %v1748_v32 = vadd.f32 %v269_v29, %v1700_v8  ;;  %v271_v33 = vpop.f32.mrb[5].mxu1 }
 0x127   :  { %v1751_v34 = vadd.f32 %v223_v31, %v1704_v9  ;;  %348 = vmax.xlane.f32.xlu1 %v347_v28  ;;  %345 = vmax.xlane.f32.xlu0 %v344_v26  ;;  %v1756_v36 = vadd.f32 %v271_v33, %v1704_v9 }
 0x128   :  { %746 = vst [vmem:[#allocation9 + $0x20] sm:$0xff] %v1745_v30  ;;  %762 = vst [vmem:[#allocation9 + $0xa0] sm:$0xff] %v1748_v32 }
 0x129   :  { %747 = vst [vmem:[#allocation9 + $0x28] sm:$0xff] %v1751_v34  ;;  %v227_v37 = vpop.f32.mrb[6].mxu0  ;;  %v326_v38 = vmax.f32 %v1745_v30, %v1751_v34  ;;  %763 = vst [vmem:[#allocation9 + $0xa8] sm:$0xff] %v1756_v36  ;;  %v275_v39 = vpop.f32.mrb[6].mxu1  ;;  %v350_v46 = vmax.f32 %v1748_v32, %v1756_v36 }
 0x12a   :  { %v1765_v40 = vadd.f32 %v227_v37, %v1700_v8  ;;  %v229_v41 = vpop.f32.mrb[7].mxu0  ;;  %v1768_v42 = vadd.f32 %v275_v39, %v1700_v8  ;;  %v277_v43 = vpop.f32.mrb[7].mxu1 }
 0x12b   :  { %v1771_v44 = vadd.f32 %v229_v41, %v1704_v9  ;;  %327 = vmax.xlane.f32.xlu1 %v326_v38  ;;  %324 = vmax.xlane.f32.xlu0 %v323_v35  ;;  %v1774_v45 = vadd.f32 %v277_v43, %v1704_v9  ;;  %v1866_v43 = vld [vmem:[#allocation2] sm:$0xff] }
 0x12c   :  { %748 = vst [vmem:[#allocation9 + $0x30] sm:$0xff] %v1765_v40  ;;  %764 = vst [vmem:[#allocation9 + $0xb0] sm:$0xff] %v1768_v42 }
 0x12d   :  { %749 = vst [vmem:[#allocation9 + $0x38] sm:$0xff] %v1771_v44  ;;  %765 = vst [vmem:[#allocation9 + $0xb8] sm:$0xff] %v1774_v45  ;;  %v233_v47 = vpop.f32.mrb[8].mxu0  ;;  %v329_v48 = vmax.f32 %v1765_v40, %v1771_v44  ;;  %v281_v49 = vpop.f32.mrb[8].mxu1  ;;  %v353_v55 = vmax.f32 %v1768_v42, %v1774_v45 }
 0x12e   :  { %v1785_v50 = vadd.f32 %v233_v47, %v1700_v8  ;;  %v235_v51 = vpop.f32.mrb[9].mxu0  ;;  %v1788_v52 = vadd.f32 %v281_v49, %v1700_v8  ;;  %v283_v53 = vpop.f32.mrb[9].mxu1  ;;  %v1873_v49 = vld [vmem:[#allocation2 + $0x40] sm:$0xff] }
 0x12f   :  { %330 = vmax.xlane.f32.xlu1 %v329_v48  ;;  %v1791_v54 = vadd.f32 %v235_v51, %v1704_v9  ;;  %351 = vmax.xlane.f32.xlu0 %v350_v46  ;;  %v1796_v56 = vadd.f32 %v283_v53, %v1704_v9  ;;  %v1871_v48 = vld [vmem:[#allocation2 + $0x48] sm:$0xff]  ;;  %v1985_v51 = vld [vmem:[#allocation2 + $0x70] sm:$0xff] }
 0x130   :  { %750 = vst [vmem:[#allocation9 + $0x40] sm:$0xff] %v1785_v50  ;;  %766 = vst [vmem:[#allocation9 + $0xc0] sm:$0xff] %v1788_v52 }
 0x131   :  { %751 = vst [vmem:[#allocation9 + $0x48] sm:$0xff] %v1791_v54  ;;  %v239_v57 = vpop.f32.mrb[10].mxu0  ;;  %767 = vst [vmem:[#allocation9 + $0xc8] sm:$0xff] %v1796_v56  ;;  %v287_v58 = vpop.f32.mrb[10].mxu1  ;;  %v332_v59 = vmax.f32 %v1785_v50, %v1791_v54  ;;  %v356_v6 = vmax.f32 %v1788_v52, %v1796_v56 }
 0x132   :  { %v1805_v60 = vadd.f32 %v239_v57, %v1700_v8  ;;  %v241_v61 = vpop.f32.mrb[11].mxu0  ;;  %v1808_v62 = vadd.f32 %v287_v58, %v1700_v8  ;;  %v289_v63 = vpop.f32.mrb[11].mxu1  ;;  %2255 = vst [vmem:[#allocation24_spill] sm:$0xff] %v1985_v51 }
 0x133   :  { %v1811_v2 = vadd.f32 %v241_v61, %v1704_v9  ;;  %354 = vmax.xlane.f32.xlu1 %v353_v55  ;;  %v1814_v3 = vadd.f32 %v289_v63, %v1704_v9  ;;  %333 = vmax.xlane.f32.xlu0 %v332_v59  ;;  %v1886_v59 = vld [vmem:[#allocation2 + $0x10] sm:$0xff]  ;;  %v1888_v61 = vld [vmem:[#allocation2 + $0x8] sm:$0xff] }
 0x134   :  { %752 = vst [vmem:[#allocation9 + $0x50] sm:$0xff] %v1805_v60  ;;  %768 = vst [vmem:[#allocation9 + $0xd0] sm:$0xff] %v1808_v62 }
 0x135   :  { %753 = vst [vmem:[#allocation9 + $0x58] sm:$0xff] %v1811_v2  ;;  %769 = vst [vmem:[#allocation9 + $0xd8] sm:$0xff] %v1814_v3  ;;  %v245_v0 = vpop.f32.mrb[12].mxu0  ;;  %v335_v10 = vmax.f32 %v1805_v60, %v1811_v2  ;;  %v293_v12 = vpop.f32.mrb[12].mxu1  ;;  %v359_v23 = vmax.f32 %v1808_v62, %v1814_v3 }
 0x136   :  { %v1825_v14 = vadd.f32 %v245_v0, %v1700_v8  ;;  %v247_v17 = vpop.f32.mrb[13].mxu0  ;;  %v1828_v18 = vadd.f32 %v293_v12, %v1700_v8  ;;  %v295_v19 = vpop.f32.mrb[13].mxu1 }
 0x137   :  { %336 = vmax.xlane.f32.xlu1 %v335_v10  ;;  %v1831_v21 = vadd.f32 %v247_v17, %v1704_v9  ;;  %v1836_v26 = vadd.f32 %v295_v19, %v1704_v9  ;;  %357 = vmax.xlane.f32.xlu0 %v356_v6  ;;  %v1906_v17 = vld [vmem:[#allocation2 + $0x18] sm:$0xff]  ;;  %v1908_v19 = vld [vmem:[#allocation2 + $0x50] sm:$0xff] }
 0x138   :  { %754 = vst [vmem:[#allocation9 + $0x60] sm:$0xff] %v1825_v14  ;;  %770 = vst [vmem:[#allocation9 + $0xe0] sm:$0xff] %v1828_v18 }
 0x139   :  { %755 = vst [vmem:[#allocation9 + $0x68] sm:$0xff] %v1831_v21  ;;  %v251_v27 = vpop.f32.mrb[14].mxu0  ;;  %771 = vst [vmem:[#allocation9 + $0xe8] sm:$0xff] %v1836_v26  ;;  %v299_v28 = vpop.f32.mrb[14].mxu1  ;;  %v338_v29 = vmax.f32 %v1825_v14, %v1831_v21  ;;  %v362_v41 = vmax.f32 %v1828_v18, %v1836_v26 }
 0x13a   :  { %v1845_v31 = vadd.f32 %v251_v27, %v1700_v8  ;;  %v253_v33 = vpop.f32.mrb[15].mxu0  ;;  %v1848_v35 = vadd.f32 %v299_v28, %v1700_v8  ;;  %v301_v37 = vpop.f32.mrb[15].mxu1  ;;  %v1983_v27 = vld [vmem:[#allocation2 + $0x38] sm:$0xff] }
 0x13b   :  { %v1851_v38 = vadd.f32 %v253_v33, %v1704_v9  ;;  %360 = vmax.xlane.f32.xlu1 %v359_v23  ;;  %v1854_v39 = vadd.f32 %v301_v37, %v1704_v9  ;;  %339 = vmax.xlane.f32.xlu0 %v338_v29  ;;  %v1966_v23 = vld [vmem:[#allocation2 + $0x30] sm:$0xff]  ;;  %2254 = vst [vmem:[#allocation23_spill] sm:$0xff] %v1983_v27 }
 0x13c   :  { %756 = vst [vmem:[#allocation9 + $0x70] sm:$0xff] %v1845_v31  ;;  %772 = vst [vmem:[#allocation9 + $0xf0] sm:$0xff] %v1848_v35 }
 0x13d   :  { %757 = vst [vmem:[#allocation9 + $0x78] sm:$0xff] %v1851_v38  ;;  %773 = vst [vmem:[#allocation9 + $0xf8] sm:$0xff] %v1854_v39  ;;  %v341_v8 = vmax.f32 %v1845_v31, %v1851_v38  ;;  %v365_v9 = vmax.f32 %v1848_v35, %v1854_v39 }
 0x13e   :  { %2251 = vst [vmem:[#allocation20_spill] sm:$0xff] %v1966_v23 }
 0x13f   :  { %342 = vmax.xlane.f32.xlu1 %v341_v8  ;;  %363 = vmax.xlane.f32.xlu0 %v362_v41  ;;  %v1925_v41 = vld [vmem:[#allocation2 + $0x58] sm:$0xff]  ;;  %v1927_v8 = vld [vmem:[#allocation2 + $0x20] sm:$0xff] }
 0x143   :  { %366 = vmax.xlane.f32.xlu1 %v365_v9 }
 0x1b0   :  { %v322_v46 = vpop.xlane.xlu0 %321 }
 0x1b1   :  { %v1869_v47 = vmax.f32 %v1866_v43, %v322_v46  ;;  %v1964_v46 = vld [vmem:[#allocation2 + $0x68] sm:$0xff] }
 0x1b2   :  { %2250 = vst [vmem:[#allocation19_spill] sm:$0xff] %v1964_v46 }
 0x1b3   :  { %721 = vst.msk [vmem:[#allocation2] sm:$0xff] %vm50_vm0, %v1869_v47  ;;  %466 = vperm.xlu0 %1299, %v1869_v47  }
 0x1b4   :  { %v349_v53 = vpop.xlane.xlu1 %348  ;;  %v346_v55 = vpop.xlane.xlu0 %345 }
 0x1b5   :  { %v1881_v57 = vmax.f32 %v1871_v48, %v349_v53  ;;  %v1884_v58 = vmax.f32 %v1873_v49, %v346_v55 }
 0x1b7   :  { %730 = vst.msk [vmem:[#allocation2 + $0x48] sm:$0xff] %vm50_vm0, %v1881_v57  ;;  %729 = vst.msk [vmem:[#allocation2 + $0x40] sm:$0xff] %vm50_vm0, %v1884_v58  ;;  %506 = vperm.xlu1 %1300, %v1884_v58   ;;  %511 = vperm.xlu0 %1299, %v1881_v57  }
 0x1b8   :  { %v328_v6 = vpop.xlane.xlu1 %327  ;;  %v325_v0 = vpop.xlane.xlu0 %324 }
 0x1b9   :  { %v1901_v10 = vmax.f32 %v1886_v59, %v328_v6  ;;  %v1904_v12 = vmax.f32 %v1888_v61, %v325_v0 }
 0x1bb   :  { %723 = vst.msk [vmem:[#allocation2 + $0x10] sm:$0xff] %vm50_vm0, %v1901_v10  ;;  %722 = vst.msk [vmem:[#allocation2 + $0x8] sm:$0xff] %vm50_vm0, %v1904_v12  ;;  %471 = vperm.xlu1 %1300, %v1904_v12  }
 0x1bc   :  { %v331_v28 = vpop.xlane.xlu1 %330  ;;  %v352_v29 = vpop.xlane.xlu0 %351 }
 0x1bd   :  { %v1920_v33 = vmax.f32 %v1906_v17, %v331_v28  ;;  %v1923_v37 = vmax.f32 %v1908_v19, %v352_v29  ;;  %v1944_v28 = vld [vmem:[#allocation2 + $0x28] sm:$0xff]  ;;  %v1946_v29 = vld [vmem:[#allocation2 + $0x60] sm:$0xff] }
 0x1be   :  { %2246 = vst [vmem:[#allocation15_spill] sm:$0xff] %v1944_v28  ;;  %2247 = vst [vmem:[#allocation16_spill] sm:$0xff] %v1946_v29 }
 0x1bf   :  { %724 = vst.msk [vmem:[#allocation2 + $0x18] sm:$0xff] %vm50_vm0, %v1920_v33  ;;  %731 = vst.msk [vmem:[#allocation2 + $0x50] sm:$0xff] %vm50_vm0, %v1923_v37  ;;  %476 = vperm.xlu1 %1300, %v1901_v10  }
 0x1c0   :  { %v355_v53 = vpop.xlane.xlu1 %354  ;;  %v334_v55 = vpop.xlane.xlu0 %333 }
 0x1c1   :  { %v1939_v6 = vmax.f32 %v1925_v41, %v355_v53  ;;  %v1942_v0 = vmax.f32 %v1927_v8, %v334_v55 }
 0x1c3   :  { %2245 = vst [vmem:[#allocation14_spill] sm:$0xff] %v1942_v0  ;;  %732 = vst.msk [vmem:[#allocation2 + $0x58] sm:$0xff] %vm50_vm0, %v1939_v6  ;;  %516 = vperm.xlu1 %1300, %v1923_v37   ;;  %521 = vperm.xlu0 %1299, %v1939_v6  }
 0x1c4   :  { %725 = vst.msk [vmem:[#allocation2 + $0x20] sm:$0xff] %vm50_vm0, %v1942_v0  ;;  %v337_v55 = vpop.xlane.xlu1 %336  ;;  %v358_v5 = vpop.xlane.xlu0 %357 }
 0x1c5   :  { %v1959_v9 = vmax.f32 %v1944_v28, %v337_v55  ;;  %v1962_v7 = vmax.f32 %v1946_v29, %v358_v5 }
 0x1c7   :  { %2248 = vst [vmem:[#allocation17_spill] sm:$0xff] %v1959_v9  ;;  %2249 = vst [vmem:[#allocation18_spill] sm:$0xff] %v1962_v7  ;;  %481 = vperm.xlu1 %1300, %v1920_v33  }
 0x1c8   :  { %726 = vst.msk [vmem:[#allocation2 + $0x28] sm:$0xff] %vm50_vm0, %v1959_v9  ;;  %733 = vst.msk [vmem:[#allocation2 + $0x60] sm:$0xff] %vm50_vm0, %v1962_v7  ;;  %v361_v5 = vpop.xlane.xlu1 %360  ;;  %v340_v55 = vpop.xlane.xlu0 %339 }
 0x1c9   :  { %v1978_v63 = vmax.f32 %v1964_v46, %v361_v5  ;;  %v1981_v1 = vmax.f32 %v1966_v23, %v340_v55  ;;  %v2003_v46 = vld [vmem:[#allocation2 + $0x78] sm:$0xff] }
 0x1ca   :  { %2258 = vst [vmem:[#allocation27_spill] sm:$0xff] %v2003_v46 }
 0x1cb   :  { %2252 = vst [vmem:[#allocation21_spill] sm:$0xff] %v1978_v63  ;;  %2253 = vst [vmem:[#allocation22_spill] sm:$0xff] %v1981_v1  ;;  %486 = vperm.xlu1 %1300, %v1942_v0   ;;  %531 = vperm.xlu0 %1299, %v1978_v63  }
 0x1cc   :  { %734 = vst.msk [vmem:[#allocation2 + $0x68] sm:$0xff] %vm50_vm0, %v1978_v63  ;;  %727 = vst.msk [vmem:[#allocation2 + $0x30] sm:$0xff] %vm50_vm0, %v1981_v1  ;;  %v343_v55 = vpop.xlane.xlu1 %342  ;;  %v364_v53 = vpop.xlane.xlu0 %363 }
 0x1cd   :  { %v1998_v28 = vmax.f32 %v1983_v27, %v343_v55  ;;  %v2001_v4 = vmax.f32 %v1985_v51, %v364_v53 }
 0x1cf   :  { %2256 = vst [vmem:[#allocation25_spill] sm:$0xff] %v1998_v28  ;;  %2257 = vst [vmem:[#allocation26_spill] sm:$0xff] %v2001_v4  ;;  %526 = vperm.xlu1 %1300, %v1962_v7  }
 0x1d0   :  { %728 = vst.msk [vmem:[#allocation2 + $0x38] sm:$0xff] %vm50_vm0, %v1998_v28  ;;  %735 = vst.msk [vmem:[#allocation2 + $0x70] sm:$0xff] %vm50_vm0, %v2001_v4  ;;  %v367_v55 = vpop.xlane.xlu1 %366 }
 0x1d1   :  { %v2015_v53 = vmax.f32 %v2003_v46, %v367_v55 }
 0x1d3   :  { %2259 = vst [vmem:[#allocation28_spill] sm:$0xff] %v2015_v53  ;;  %736 = vst.msk [vmem:[#allocation2 + $0x78] sm:$0xff] %vm50_vm0, %v2015_v53  ;;  %491 = vperm.xlu1 %1300, %v1959_v9   ;;  %541 = vperm.xlu0 %1299, %v2015_v53  }
 0x1d7   :  { %496 = vperm.xlu1 %1300, %v1981_v1  }
 0x1db   :  { %501 = vperm.xlu1 %1300, %v1998_v28  }
 0x1df   :  { %536 = vperm.xlu1 %1300, %v2001_v4  }
 0x232   :  { %v467_v5 = vpop.permute.xlu0 %466 }
 0x233   :  { %v544_v55 = vsub.f32 %v1707_v11, %v467_v5  ;;  %v545_v29 = vsub.f32 %v1713_v15, %v467_v5 }
 0x235   :  { %v576_v51 = vmul.f32 1.442695, %v544_v55  ;;  %v578_v23 = vmul.f32 1.442695, %v545_v29 }
 0x236   :  { %v507_v46 = vpop.permute.xlu1 %506  ;;  %v512_v27 = vpop.permute.xlu0 %511 }
 0x237   :  { %1301 = vpow2.f32 %v576_v51  ;;  %v560_v63 = vsub.f32 %v1710_v13, %v507_v46  ;;  %v561_v53 = vsub.f32 %v1716_v16, %v507_v46  ;;  %v562_v1 = vsub.f32 %v1725_v20, %v512_v27 }
 0x238   :  { %1303 = vpow2.f32 %v578_v23  ;;  %v563_v28 = vsub.f32 %v1731_v24, %v512_v27 }
 0x239   :  { %v608_v4 = vmul.f32 1.442695, %v560_v63  ;;  %v610_v9 = vmul.f32 1.442695, %v561_v53  ;;  %v612_v7 = vmul.f32 1.442695, %v562_v1 }
 0x23a   :  { %v614_v11 = vmul.f32 1.442695, %v563_v28  ;;  %v472_v0 = vpop.permute.xlu1 %471 }
 0x23b   :  { %1305 = vpow2.f32 %v608_v4  ;;  %v546_v15 = vsub.f32 %v1728_v22, %v472_v0  ;;  %v547_v29 = vsub.f32 %v1734_v25, %v472_v0 }
 0x23c   :  { %1307 = vpow2.f32 %v610_v9 }
 0x23d   :  { %1309 = vpow2.f32 %v612_v7  ;;  %v580_v13 = vmul.f32 1.442695, %v546_v15  ;;  %v582_v51 = vmul.f32 1.442695, %v547_v29 }
 0x23e   :  { %1311 = vpow2.f32 %v614_v11  ;;  %v477_v16 = vpop.permute.xlu1 %476 }
 0x23f   :  { %1313 = vpow2.f32 %v580_v13  ;;  %v548_v20 = vsub.f32 %v1745_v30, %v477_v16  ;;  %v549_v24 = vsub.f32 %v1751_v34, %v477_v16 }
 0x240   :  { %1315 = vpow2.f32 %v582_v51 }
 0x241   :  { %v1302_v63 = vpop.eup %1301  ;;  %v584_v1 = vmul.f32 1.442695, %v548_v20  ;;  %v586_v23 = vmul.f32 1.442695, %v549_v24 }
 0x242   :  { %v1304_v4 = vpop.eup %1303  ;;  %v517_v27 = vpop.permute.xlu1 %516 }
 0x243   :  { %v522_v22 = vpop.permute.xlu0 %521  ;;  %1317 = vpow2.f32 %v584_v1  ;;  %v564_v25 = vsub.f32 %v1748_v32, %v517_v27  ;;  %v565_v7 = vsub.f32 %v1756_v36, %v517_v27  ;;  %v640_v46 = vadd.f32 %v1304_v4, %v1302_v63 }
 0x244   :  { %v566_v9 = vsub.f32 %v1768_v42, %v522_v22  ;;  %1319 = vpow2.f32 %v586_v23  ;;  %v567_v34 = vsub.f32 %v1774_v45, %v522_v22 }
 0x245   :  { %v1306_v0 = vpop.eup %1305  ;;  %v616_v30 = vmul.f32 1.442695, %v564_v25  ;;  %v618_v28 = vmul.f32 1.442695, %v565_v7  ;;  %641 = vadd.xlane.f32.xlu1 %v640_v46 }
 0x246   :  { %v1308_v5 = vpop.eup %1307  ;;  %v620_v53 = vmul.f32 1.442695, %v566_v9  ;;  %v482_v55 = vpop.permute.xlu1 %481  ;;  %v622_v13 = vmul.f32 1.442695, %v567_v34 }
 0x247   :  { %v1310_v11 = vpop.eup %1309  ;;  %1321 = vpow2.f32 %v616_v30  ;;  %v550_v15 = vsub.f32 %v1765_v40, %v482_v55  ;;  %v551_v32 = vsub.f32 %v1771_v44, %v482_v55  ;;  %v664_v36 = vadd.f32 %v1308_v5, %v1306_v0 }
 0x248   :  { %v1312_v29 = vpop.eup %1311  ;;  %1323 = vpow2.f32 %v618_v28 }
 0x249   :  { %v1314_v42 = vpop.eup %1313  ;;  %v588_v51 = vmul.f32 1.442695, %v550_v15  ;;  %v590_v16 = vmul.f32 1.442695, %v551_v32  ;;  %665 = vadd.xlane.f32.xlu0 %v664_v36  ;;  %v667_v20 = vadd.f32 %v1312_v29, %v1310_v11  ;;  %1325 = vpow2.f32 %v620_v53 }
 0x24a   :  { %v1316_v45 = vpop.eup %1315  ;;  %v487_v24 = vpop.permute.xlu1 %486 }
 0x24b   :  { %1327 = vpow2.f32 %v588_v51  ;;  %668 = vadd.xlane.f32.xlu1 %v667_v20  ;;  %v552_v63 = vsub.f32 %v1785_v50, %v487_v24  ;;  %v553_v40 = vsub.f32 %v1791_v54, %v487_v24  ;;  %v643_v44 = vadd.f32 %v1316_v45, %v1314_v42  ;;  %v532_v22 = vpop.permute.xlu0 %531 }
 0x24c   :  { %1329 = vpow2.f32 %v590_v16  ;;  %v570_v54 = vsub.f32 %v1808_v62, %v532_v22  ;;  %v571_v34 = vsub.f32 %v1814_v3, %v532_v22 }
 0x24d   :  { %v1318_v1 = vpop.eup %1317  ;;  %1331 = vpow2.f32 %v622_v13  ;;  %v592_v23 = vmul.f32 1.442695, %v552_v63  ;;  %v594_v4 = vmul.f32 1.442695, %v553_v40  ;;  %644 = vadd.xlane.f32.xlu0 %v643_v44 }
 0x24e   :  { %v1320_v27 = vpop.eup %1319  ;;  %v527_v25 = vpop.permute.xlu1 %526  ;;  %v628_v15 = vmul.f32 1.442695, %v570_v54  ;;  %v630_v29 = vmul.f32 1.442695, %v571_v34 }
 0x24f   :  { %1333 = vpow2.f32 %v592_v23  ;;  %v568_v7 = vsub.f32 %v1788_v52, %v527_v25  ;;  %v569_v9 = vsub.f32 %v1796_v56, %v527_v25  ;;  %v646_v46 = vadd.f32 %v1320_v27, %v1318_v1 }
 0x250   :  { %1335 = vpow2.f32 %v594_v4 }
 0x251   :  { %v1322_v50 = vpop.eup %1321  ;;  %v624_v0 = vmul.f32 1.442695, %v568_v7  ;;  %v626_v30 = vmul.f32 1.442695, %v569_v9  ;;  %647 = vadd.xlane.f32.xlu0 %v646_v46 }
 0x252   :  { %v1324_v28 = vpop.eup %1323  ;;  %v492_v5 = vpop.permute.xlu1 %491 }
 0x253   :  { %1337 = vpow2.f32 %v624_v0  ;;  %v554_v53 = vsub.f32 %v1805_v60, %v492_v5  ;;  %v555_v55 = vsub.f32 %v1811_v2, %v492_v5  ;;  %v1326_v52 = vpop.eup %1325  ;;  %v670_v56 = vadd.f32 %v1324_v28, %v1322_v50  ;;  %v542_v42 = vpop.permute.xlu0 %541 }
 0x254   :  { %1339 = vpow2.f32 %v626_v30  ;;  %v574_v20 = vsub.f32 %v1848_v35, %v542_v42  ;;  %v575_v40 = vsub.f32 %v1854_v39, %v542_v42  ;;  %v810_v42 = vld [vmem:[#allocation2 + $0x8] sm:$0xff] }
 0x255   :  { %v1328_v11 = vpop.eup %1327  ;;  %v596_v32 = vmul.f32 1.442695, %v554_v53  ;;  %v598_v36 = vmul.f32 1.442695, %v555_v55  ;;  %671 = vadd.xlane.f32.xlu0 %v670_v56 }
 0x256   :  { %v1330_v62 = vpop.eup %1329  ;;  %v497_v13 = vpop.permute.xlu1 %496  ;;  %v636_v27 = vmul.f32 1.442695, %v574_v20  ;;  %v638_v7 = vmul.f32 1.442695, %v575_v40  ;;  %v817_v20 = vld [vmem:[#allocation2 + $0x40] sm:$0xff] }
 0x257   :  { %v1332_v3 = vpop.eup %1331  ;;  %1341 = vpow2.f32 %v596_v32  ;;  %v556_v51 = vsub.f32 %v1825_v14, %v497_v13  ;;  %v557_v60 = vsub.f32 %v1831_v21, %v497_v13  ;;  %v649_v16 = vadd.f32 %v1330_v62, %v1328_v11  ;;  %v811_v13 = vld [vmem:[#allocation2 + $0x10] sm:$0xff]  ;;  %v821_v40 = vld [vmem:[#allocation2 + $0x60] sm:$0xff] }
 0x258   :  { %1343 = vpow2.f32 %v598_v36  ;;  %v673_v1 = vadd.f32 %v1332_v3, %v1326_v52  ;;  %v809_v3 = vld [vmem:[#allocation2] sm:$0xff] }
 0x259   :  { %v1334_v2 = vpop.eup %1333  ;;  %1345 = vpow2.f32 %v628_v15  ;;  %v600_v45 = vmul.f32 1.442695, %v556_v51  ;;  %v602_v24 = vmul.f32 1.442695, %v557_v60  ;;  %650 = vadd.xlane.f32.xlu1 %v649_v16  ;;  %v813_v51 = vld [vmem:[#allocation2 + $0x20] sm:$0xff]  ;;  %v812_v60 = vld [vmem:[#allocation2 + $0x18] sm:$0xff] }
 0x25a   :  { %v1336_v63 = vpop.eup %1335  ;;  %1347 = vpow2.f32 %v630_v29  ;;  %v502_v44 = vpop.permute.xlu1 %501  ;;  %v815_v16 = vld [vmem:[#allocation2 + $0x30] sm:$0xff] }
 0x25b   :  { %1349 = vpow2.f32 %v600_v45  ;;  %v558_v14 = vsub.f32 %v1845_v31, %v502_v44  ;;  %v559_v21 = vsub.f32 %v1851_v38, %v502_v44  ;;  %v652_v23 = vadd.f32 %v1336_v63, %v1334_v2  ;;  %v814_v2 = vld [vmem:[#allocation2 + $0x28] sm:$0xff]  ;;  %v816_v45 = vld [vmem:[#allocation2 + $0x38] sm:$0xff] }
 0x25c   :  { %1351 = vpow2.f32 %v602_v24  ;;  %v819_v24 = vld [vmem:[#allocation2 + $0x50] sm:$0xff]  ;;  %v818_v63 = vld [vmem:[#allocation2 + $0x48] sm:$0xff]  ;;  %v820_v44 = vld [vmem:[#allocation2 + $0x58] sm:$0xff] }
 0x25d   :  { %v1338_v4 = vpop.eup %1337  ;;  %v604_v22 = vmul.f32 1.442695, %v558_v14  ;;  %v606_v35 = vmul.f32 1.442695, %v559_v21  ;;  %653 = vadd.xlane.f32.xlu0 %v652_v23  ;;  %674 = vadd.xlane.f32.xlu1 %v673_v1  ;;  %v823_v1 = vld [vmem:[#allocation2 + $0x70] sm:$0xff]  ;;  %v822_v14 = vld [vmem:[#allocation2 + $0x68] sm:$0xff]  ;;  %v2260_v23 = vsub.f32 %v1866_v43, %v1869_v47 }
 0x25e   :  { %v1340_v25 = vpop.eup %1339  ;;  %v537_v9 = vpop.permute.xlu1 %536  ;;  %v824_v21 = vld [vmem:[#allocation2 + $0x78] sm:$0xff] }
 0x25f   :  { %1353 = vpow2.f32 %v604_v22  ;;  %v572_v39 = vsub.f32 %v1828_v18, %v537_v9  ;;  %v573_v46 = vsub.f32 %v1836_v26, %v537_v9  ;;  %v676_v50 = vadd.f32 %v1340_v25, %v1338_v4 }
 0x260   :  { %1355 = vpow2.f32 %v606_v35  ;;  %v416_v4 = vmul.f32 1.442695, %v2260_v23  ;;  %v2262_v35 = vsub.f32 %v1871_v48, %v1881_v57  ;;  %v2279_v23 = vld [vmem:[#allocation20_spill] sm:$0xff] }
 0x261   :  { %v1342_v31 = vpop.eup %1341  ;;  %1357 = vpow2.f32 %v636_v27  ;;  %v632_v38 = vmul.f32 1.442695, %v572_v39  ;;  %v634_v54 = vmul.f32 1.442695, %v573_v46  ;;  %677 = vadd.xlane.f32.xlu0 %v676_v50  ;;  %v2261_v27 = vsub.f32 %v1873_v49, %v1884_v58  ;;  %v384_v46 = vld [vmem:[#allocation3] sm:$0xff] }
 0x262   :  { %v1344_v0 = vpop.eup %1343  ;;  %1359 = vpow2.f32 %v638_v7  ;;  %v434_v25 = vmul.f32 1.442695, %v2262_v35  ;;  %v2263_v7 = vsub.f32 %v1888_v61, %v1904_v12  ;;  %v2264_v39 = vsub.f32 %v1886_v59, %v1901_v10  ;;  %v392_v50 = vld [vmem:[#allocation3 + $0x40] sm:$0xff]  ;;  %v393_v59 = vld [vmem:[#allocation3 + $0x48] sm:$0xff] }
 0x263   :  { %v1346_v30 = vpop.eup %1345  ;;  %1361 = vpow2.f32 %v632_v38  ;;  %v655_v28 = vadd.f32 %v1344_v0, %v1342_v31  ;;  %v432_v22 = vmul.f32 1.442695, %v2261_v27  ;;  %v2265_v49 = vsub.f32 %v1908_v19, %v1923_v37 }
 0x264   :  { %v1348_v34 = vpop.eup %1347  ;;  %1363 = vpow2.f32 %v634_v54  ;;  %v418_v9 = vmul.f32 1.442695, %v2263_v7  ;;  %v420_v43 = vmul.f32 1.442695, %v2264_v39  ;;  %v2266_v61 = vsub.f32 %v1906_v17, %v1920_v33 }
 0x265   :  { %v1350_v5 = vpop.eup %1349  ;;  %656 = vadd.xlane.f32.xlu1 %v655_v28  ;;  %v679_v55 = vadd.f32 %v1348_v34, %v1346_v30  ;;  %1365 = vpow2.f32 %v416_v4  ;;  %v436_v58 = vmul.f32 1.442695, %v2265_v49  ;;  %v2267_v19 = vsub.f32 %v1925_v41, %v1939_v6  ;;  %v386_v41 = vld [vmem:[#allocation3 + $0x10] sm:$0xff]  ;;  %v2270_v6 = vld [vmem:[#allocation16_spill] sm:$0xff]  ;;  %v2280_v4 = vld [vmem:[#allocation22_spill] sm:$0xff] }
 0x266   :  { %v1352_v53 = vpop.eup %1351  ;;  %1367 = vpow2.f32 %v432_v22  ;;  %v422_v12 = vmul.f32 1.442695, %v2266_v61  ;;  %v2281_v27 = vsub.f32 %v2279_v23, %v2280_v4 }
 0x267   :  { %v658_v18 = vadd.f32 %v1352_v53, %v1350_v5  ;;  %1369 = vpow2.f32 %v434_v25  ;;  %v438_v37 = vmul.f32 1.442695, %v2267_v19  ;;  %v385_v5 = vld [vmem:[#allocation3 + $0x8] sm:$0xff] }
 0x268   :  { %1371 = vpow2.f32 %v418_v9  ;;  %v2268_v53 = vld [vmem:[#allocation14_spill] sm:$0xff]  ;;  %v428_v22 = vmul.f32 1.442695, %v2281_v27 }
 0x269   :  { %v1354_v26 = vpop.eup %1353  ;;  %659 = vadd.xlane.f32.xlu0 %v658_v18  ;;  %680 = vadd.xlane.f32.xlu1 %v679_v55  ;;  %1373 = vpow2.f32 %v420_v43  ;;  %v2269_v17 = vsub.f32 %v1927_v8, %v2268_v53 }
 0x26a   :  { %v1356_v52 = vpop.eup %1355  ;;  %1375 = vpow2.f32 %v436_v58 }
 0x26b   :  { %v1358_v56 = vpop.eup %1357  ;;  %v661_v11 = vadd.f32 %v1356_v52, %v1354_v26  ;;  %1377 = vpow2.f32 %v422_v12  ;;  %v424_v33 = vmul.f32 1.442695, %v2269_v17 }
 0x26c   :  { %v1360_v15 = vpop.eup %1359  ;;  %1379 = vpow2.f32 %v438_v37  ;;  %v2285_v37 = vld [vmem:[#allocation24_spill] sm:$0xff] }
 0x26d   :  { %v1362_v32 = vpop.eup %1361  ;;  %662 = vadd.xlane.f32.xlu1 %v661_v11  ;;  %v685_v29 = vadd.f32 %v1360_v15, %v1358_v56  ;;  %1381 = vpow2.f32 %v424_v33  ;;  %v2271_v11 = vld [vmem:[#allocation18_spill] sm:$0xff]  ;;  %v2288_v33 = vld [vmem:[#allocation27_spill] sm:$0xff] }
 0x26e   :  { %v1364_v36 = vpop.eup %1363  ;;  %v2272_v15 = vsub.f32 %v2270_v6, %v2271_v11  ;;  %v389_v11 = vld [vmem:[#allocation3 + $0x28] sm:$0xff] }
 0x26f   :  { %v682_v62 = vadd.f32 %v1364_v36, %v1362_v32  ;;  %v1366_v47 = vpop.eup %1365 }
 0x270   :  { %v1368_v48 = vpop.eup %1367  ;;  %v448_v57 = vmul.f32 %v1366_v47, %v384_v46  ;;  %v440_v32 = vmul.f32 1.442695, %v2272_v15  ;;  %v395_v47 = vld [vmem:[#allocation3 + $0x58] sm:$0xff]  ;;  %v388_v46 = vld [vmem:[#allocation3 + $0x20] sm:$0xff] }
 0x271   :  { %683 = vadd.xlane.f32.xlu0 %v682_v62  ;;  %686 = vadd.xlane.f32.xlu1 %v685_v29  ;;  %v1370_v38 = vpop.eup %1369  ;;  %v456_v10 = vmul.f32 %v1368_v48, %v392_v50  ;;  %v2283_v50 = vld [vmem:[#allocation25_spill] sm:$0xff] }
 0x272   :  { %v1372_v30 = vpop.eup %1371  ;;  %v457_v28 = vmul.f32 %v1370_v38, %v393_v59 }
 0x273   :  { %v449_v26 = vmul.f32 %v1372_v30, %v385_v5  ;;  %v1374_v52 = vpop.eup %1373  ;;  %v396_v30 = vld [vmem:[#allocation3 + $0x60] sm:$0xff] }
 0x274   :  { %v450_v8 = vmul.f32 %v1374_v52, %v386_v41  ;;  %v1376_v29 = vpop.eup %1375 }
 0x282   :  { %864 = vperm.xlu1 %1300, %v810_v42  }
 0x286   :  { %869 = vperm.xlu1 %1300, %v811_v13   ;;  %v394_v13 = vld [vmem:[#allocation3 + $0x50] sm:$0xff] }
 0x287   :  { %859 = vperm.xlu0 %1299, %v809_v3   ;;  %v2273_v3 = vld [vmem:[#allocation15_spill] sm:$0xff] }
 0x28a   :  { %879 = vperm.xlu1 %1300, %v813_v51   ;;  %v2274_v51 = vld [vmem:[#allocation17_spill] sm:$0xff] }
 0x28b   :  { %874 = vperm.xlu0 %1299, %v812_v60   ;;  %v2275_v60 = vsub.f32 %v2273_v3, %v2274_v51  ;;  %v390_v3 = vld [vmem:[#allocation3 + $0x30] sm:$0xff] }
 0x28e   :  { %889 = vperm.xlu1 %1300, %v815_v16   ;;  %v426_v16 = vmul.f32 1.442695, %v2275_v60 }
 0x28f   :  { %884 = vperm.xlu0 %1299, %v814_v2  }
 0x292   :  { %899 = vperm.xlu1 %1300, %v817_v20  }
 0x293   :  { %894 = vperm.xlu0 %1299, %v816_v45   ;;  %v1378_v45 = vpop.eup %1377 }
 0x294   :  { %v1380_v25 = vpop.eup %1379 }
 0x295   :  { %v1382_v39 = vpop.eup %1381  ;;  %v459_v61 = vmul.f32 %v1380_v25, %v395_v47 }
 0x296   :  { %909 = vperm.xlu1 %1300, %v819_v24   ;;  %v458_v24 = vmul.f32 %v1376_v29, %v394_v13  ;;  %v452_v12 = vmul.f32 %v1382_v39, %v388_v46  ;;  %v397_v13 = vld [vmem:[#allocation3 + $0x68] sm:$0xff] }
 0x297   :  { %904 = vperm.xlu0 %1299, %v818_v63   ;;  %v387_v63 = vld [vmem:[#allocation3 + $0x18] sm:$0xff] }
 0x298   :  { %v451_v7 = vmul.f32 %v1378_v45, %v387_v63 }
 0x29a   :  { %919 = vperm.xlu1 %1300, %v821_v40   ;;  %v2276_v40 = vld [vmem:[#allocation19_spill] sm:$0xff] }
 0x29b   :  { %914 = vperm.xlu0 %1299, %v820_v44   ;;  %v2277_v44 = vld [vmem:[#allocation21_spill] sm:$0xff] }
 0x29e   :  { %929 = vperm.xlu1 %1300, %v823_v1   ;;  %v2278_v1 = vsub.f32 %v2276_v40, %v2277_v44 }
 0x29f   :  { %924 = vperm.xlu0 %1299, %v822_v14  }
 0x2a0   :  { %v442_v14 = vmul.f32 1.442695, %v2278_v1  ;;  %v391_v1 = vld [vmem:[#allocation3 + $0x38] sm:$0xff] }
 0x2a3   :  { %934 = vperm.xlu0 %1299, %v824_v21  }
 0x2d2   :  { %v642_v31 = vpop.xlane.xlu1 %641 }
 0x2d3   :  { %v688_v54 = vadd.f32 %v642_v31, %v448_v57  ;;  %v2282_v57 = vld [vmem:[#allocation23_spill] sm:$0xff] }
 0x2d4   :  { %v2284_v31 = vsub.f32 %v2282_v57, %v2283_v50 }
 0x2d5   :  { %705 = vst.msk [vmem:[#allocation3] sm:$0xff] %vm50_vm0, %v688_v54 }
 0x2d6   :  { %v666_v0 = vpop.xlane.xlu0 %665  ;;  %v430_v38 = vmul.f32 1.442695, %v2284_v31 }
 0x2d7   :  { %v696_v34 = vadd.f32 %v666_v0, %v456_v10 }
 0x2d8   :  { %v669_v18 = vpop.xlane.xlu1 %668 }
 0x2d9   :  { %v697_v55 = vadd.f32 %v669_v18, %v457_v28  ;;  %713 = vst.msk [vmem:[#allocation3 + $0x40] sm:$0xff] %vm50_vm0, %v696_v34  ;;  %v2286_v28 = vld [vmem:[#allocation26_spill] sm:$0xff]  ;;  %v2289_v18 = vld [vmem:[#allocation28_spill] sm:$0xff] }
 0x2da   :  { %v645_v56 = vpop.xlane.xlu0 %644  ;;  %v2287_v34 = vsub.f32 %v2285_v37, %v2286_v28 }
 0x2db   :  { %714 = vst.msk [vmem:[#allocation3 + $0x48] sm:$0xff] %vm50_vm0, %v697_v55  ;;  %v689_v36 = vadd.f32 %v645_v56, %v449_v26  ;;  %v2290_v55 = vsub.f32 %v2288_v33, %v2289_v18 }
 0x2dc   :  { %v777_v62 = vld [vmem:[#allocation3] sm:$0xff]  ;;  %v444_v5 = vmul.f32 1.442695, %v2287_v34 }
 0x2dd   :  { %706 = vst.msk [vmem:[#allocation3 + $0x8] sm:$0xff] %vm50_vm0, %v689_v36  ;;  %1383 = vrcp.f32 %v777_v62  ;;  %v446_v26 = vmul.f32 1.442695, %v2290_v55 }
 0x2de   :  { %v648_v42 = vpop.xlane.xlu0 %647  ;;  %1385 = vpow2.f32 %v440_v32 }
 0x2df   :  { %v690_v2 = vadd.f32 %v648_v42, %v450_v8 }
 0x2e0   :  { %v785_v20 = vld [vmem:[#allocation3 + $0x40] sm:$0xff] }
 0x2e1   :  { %1387 = vrcp.f32 %v785_v20  ;;  %707 = vst.msk [vmem:[#allocation3 + $0x10] sm:$0xff] %vm50_vm0, %v690_v2 }
 0x2e2   :  { %v672_v21 = vpop.xlane.xlu0 %671  ;;  %1389 = vpow2.f32 %v426_v16  ;;  %v786_v49 = vld [vmem:[#allocation3 + $0x48] sm:$0xff] }
 0x2e3   :  { %v698_v35 = vadd.f32 %v672_v21, %v458_v24 }
 0x2e4   :  { %v778_v9 = vld [vmem:[#allocation3 + $0x8] sm:$0xff] }
 0x2e5   :  { %715 = vst.msk [vmem:[#allocation3 + $0x50] sm:$0xff] %vm50_vm0, %v698_v35  ;;  %1391 = vrcp.f32 %v778_v9  ;;  %v398_v9 = vld [vmem:[#allocation3 + $0x70] sm:$0xff] }
 0x2e6   :  { %v651_v43 = vpop.xlane.xlu1 %650  ;;  %1393 = vpow2.f32 %v442_v14 }
 0x2e7   :  { %v691_v58 = vadd.f32 %v651_v43, %v451_v7  ;;  %v1384_v48 = vpop.eup %1383  ;;  %1395 = vpow2.f32 %v428_v22  ;;  %v399_v7 = vld [vmem:[#allocation3 + $0x78] sm:$0xff] }
 0x2e8   :  { %1035 = vperm.xlu1 %1300, %v1384_v48   ;;  %1397 = vrcp.f32 %v786_v49  ;;  %v779_v54 = vld [vmem:[#allocation3 + $0x10] sm:$0xff]  ;;  %v1386_v59 = vpop.eup %1385 }
 0x2e9   :  { %708 = vst.msk [vmem:[#allocation3 + $0x18] sm:$0xff] %vm50_vm0, %v691_v58  ;;  %1399 = vrcp.f32 %v779_v54  ;;  %v460_v52 = vmul.f32 %v1386_v59, %v396_v30 }
 0x2ea   :  { %v675_v10 = vpop.xlane.xlu1 %674  ;;  %v654_v0 = vpop.xlane.xlu0 %653  ;;  %1401 = vpow2.f32 %v430_v38 }
 0x2eb   :  { %v1388_v19 = vpop.eup %1387  ;;  %v699_v53 = vadd.f32 %v675_v10, %v459_v61  ;;  %v692_v17 = vadd.f32 %v654_v0, %v452_v12 }
 0x2ec   :  { %1075 = vperm.xlu1 %1300, %v1388_v19   ;;  %v787_v56 = vld [vmem:[#allocation3 + $0x50] sm:$0xff]  ;;  %v1390_v41 = vpop.eup %1389 }
 0x2ed   :  { %716 = vst.msk [vmem:[#allocation3 + $0x58] sm:$0xff] %vm50_vm0, %v699_v53  ;;  %709 = vst.msk [vmem:[#allocation3 + $0x20] sm:$0xff] %vm50_vm0, %v692_v17  ;;  %1403 = vrcp.f32 %v787_v56  ;;  %v453_v8 = vmul.f32 %v1390_v41, %v389_v11  ;;  %v825_v41 = vld [vmem:[#allocation9] sm:$0xff]  ;;  %v826_v11 = vld [vmem:[#allocation9 + $0x8] sm:$0xff] }
 0x2ee   :  { %v678_v6 = vpop.xlane.xlu0 %677  ;;  %1405 = vpow2.f32 %v444_v5 }
 0x2ef   :  { %v700_v15 = vadd.f32 %v678_v6, %v460_v52  ;;  %v1392_v32 = vpop.eup %1391  ;;  %1407 = vpow2.f32 %v446_v26 }
 0x2f0   :  { %v780_v36 = vld [vmem:[#allocation3 + $0x18] sm:$0xff]  ;;  %v1394_v62 = vpop.eup %1393  ;;  %1040 = vperm.xlu0 %1299, %v1392_v32  }
 0x2f1   :  { %717 = vst.msk [vmem:[#allocation3 + $0x60] sm:$0xff] %vm50_vm0, %v700_v15  ;;  %1409 = vrcp.f32 %v780_v36  ;;  %v1396_v29 = vpop.eup %1395  ;;  %v461_v45 = vmul.f32 %v1394_v62, %v397_v13  ;;  %v841_v36 = vld [vmem:[#allocation9 + $0x80] sm:$0xff] }
 0x2f2   :  { %v657_v42 = vpop.xlane.xlu1 %656  ;;  %v1398_v51 = vpop.eup %1397  ;;  %v454_v24 = vmul.f32 %v1396_v29, %v390_v3  ;;  %v842_v29 = vld [vmem:[#allocation9 + $0x88] sm:$0xff] }
 0x2f3   :  { %v693_v60 = vadd.f32 %v657_v42, %v453_v8  ;;  %v1400_v16 = vpop.eup %1399 }
 0x2f4   :  { %v788_v2 = vld [vmem:[#allocation3 + $0x58] sm:$0xff]  ;;  %v781_v20 = vld [vmem:[#allocation3 + $0x20] sm:$0xff]  ;;  %1080 = vperm.xlu0 %1299, %v1398_v51   ;;  %1045 = vperm.xlu1 %1300, %v1400_v16   ;;  %v1402_v63 = vpop.eup %1401 }
 0x2f5   :  { %710 = vst.msk [vmem:[#allocation3 + $0x28] sm:$0xff] %vm50_vm0, %v693_v60  ;;  %1411 = vrcp.f32 %v788_v2  ;;  %v455_v22 = vmul.f32 %v1402_v63, %v391_v1  ;;  %v827_v60 = vld [vmem:[#allocation9 + $0x10] sm:$0xff]  ;;  %v828_v16 = vld [vmem:[#allocation9 + $0x18] sm:$0xff] }
 0x2f6   :  { %v681_v40 = vpop.xlane.xlu1 %680  ;;  %v660_v44 = vpop.xlane.xlu0 %659  ;;  %1413 = vrcp.f32 %v781_v20 }
 0x2f7   :  { %v701_v14 = vadd.f32 %v681_v40, %v461_v45  ;;  %v694_v21 = vadd.f32 %v660_v44, %v454_v24  ;;  %v1404_v23 = vpop.eup %1403  ;;  %v829_v24 = vld [vmem:[#allocation9 + $0x20] sm:$0xff]  ;;  %v830_v44 = vld [vmem:[#allocation9 + $0x28] sm:$0xff] }
 0x2f8   :  { %v789_v4 = vld [vmem:[#allocation3 + $0x60] sm:$0xff]  ;;  %v1406_v27 = vpop.eup %1405  ;;  %1085 = vperm.xlu1 %1300, %v1404_v23  }
 0x2f9   :  { %718 = vst.msk [vmem:[#allocation3 + $0x68] sm:$0xff] %vm50_vm0, %v701_v14  ;;  %711 = vst.msk [vmem:[#allocation3 + $0x30] sm:$0xff] %vm50_vm0, %v694_v21  ;;  %1415 = vrcp.f32 %v789_v4  ;;  %v1408_v35 = vpop.eup %1407  ;;  %v462_v49 = vmul.f32 %v1406_v27, %v398_v9  ;;  %v843_v21 = vld [vmem:[#allocation9 + $0x90] sm:$0xff]  ;;  %v844_v27 = vld [vmem:[#allocation9 + $0x98] sm:$0xff] }
 0x2fa   :  { %v663_v25 = vpop.xlane.xlu1 %662  ;;  %v463_v46 = vmul.f32 %v1408_v35, %v399_v7 }
 0x2fb   :  { %v1410_v39 = vpop.eup %1409  ;;  %v695_v43 = vadd.f32 %v663_v25, %v455_v22 }
 0x2fc   :  { %1050 = vperm.xlu0 %1299, %v1410_v39   ;;  %v782_v47 = vld [vmem:[#allocation3 + $0x28] sm:$0xff]  ;;  %v845_v39 = vld [vmem:[#allocation9 + $0xa0] sm:$0xff] }
 0x2fd   :  { %712 = vst.msk [vmem:[#allocation3 + $0x38] sm:$0xff] %vm50_vm0, %v695_v43  ;;  %1417 = vrcp.f32 %v782_v47  ;;  %v1145_v47 = vld [vmem:[%s2223_s3] sm:$0x3]  ;;  %s1574_s3 = smov [#allocation9]  }
 0x2fe   :  { %v687_v58 = vpop.xlane.xlu1 %686  ;;  %v684_v48 = vpop.xlane.xlu0 %683  ;;  %s1226_s18 = sshll.u32 %s1574_s3, 4  ;;  %s1227_s18 = int_to_ptr.vmem [resolvable:$true] %s1226_s18 }
 0x2ff   :  { %v1412_v57 = vpop.eup %1411  ;;  %v703_v50 = vadd.f32 %v687_v58, %v463_v46  ;;  %v702_v31 = vadd.f32 %v684_v48, %v462_v49  ;;  %v846_v46 = vld [vmem:[#allocation9 + $0xa8] sm:$0xff]  ;;  %s1537_s19 = scalar_lea.vmem %s1227_s18, 4096  ;;  %p1542_p3 = scmp.lt.s32.totalorder %s1227_s18, %s1227_s18 }
 0x300   :  { %v1414_v38 = vpop.eup %1413  ;;  %1090 = vperm.xlu0 %1299, %v1412_v57   ;;  %v790_v61 = vld [vmem:[#allocation3 + $0x68] sm:$0xff]  ;;  %v783_v12 = vld [vmem:[#allocation3 + $0x30] sm:$0xff]  ;;  %p1538_p2 = scmp.ne.s32.totalorder %s1227_s18, %s1537_s19  ;;  %p1543_p4 = scmp.lt.s32.totalorder %s1537_s19, %s1537_s19 }
 0x301   :  { %720 = vst.msk [vmem:[#allocation3 + $0x78] sm:$0xff] %vm50_vm0, %v703_v50  ;;  %719 = vst.msk [vmem:[#allocation3 + $0x70] sm:$0xff] %vm50_vm0, %v702_v31  ;;  %1055 = vperm.xlu1 %1300, %v1414_v38   ;;  %1419 = vrcp.f32 %v790_v61  ;;  %v831_v38 = vld [vmem:[#allocation9 + $0x30] sm:$0xff]  ;;  %v832_v61 = vld [vmem:[#allocation9 + $0x38] sm:$0xff] }
 0x302   :  { %1421 = vrcp.f32 %v783_v12  ;;  %v865_v53 = vpop.permute.xlu1 %864  ;;  %v2291_v12 = vld [vmem:[#allocation13_spill] sm:$0xff]  ;;  %p1544_p5 = por %p1543_p4, %p1542_p3 }
 0x303   :  { %v1416_v54 = vpop.eup %1415  ;;  %v939_v2 = vsub.f32 %v827_v60, %v865_v53  ;;  %v940_v45 = vsub.f32 %v828_v16, %v865_v53 }
 0x304   :  { %v784_v59 = vld [vmem:[#allocation3 + $0x38] sm:$0xff]  ;;  %p1545_p6 = pnand %p1544_p5, %p1538_p2 }
 0x305   :  { %1095 = vperm.xlu1 %1300, %v1416_v54   ;;  %1423 = vrcp.f32 %v784_v59  ;;  %v973_v4 = vmul.f32 1.442695, %v939_v2  ;;  %v975_v35 = vmul.f32 1.442695, %v940_v45  ;;  %v2292_v54 = vsub.s32 0, %v2291_v12 }
 0x306   :  { %v870_v17 = vpop.permute.xlu1 %869  ;;  %v860_v33 = vpop.permute.xlu0 %859 }
 0x307   :  { %v1418_v10 = vpop.eup %1417  ;;  %v937_v15 = vsub.f32 %v825_v41, %v860_v33  ;;  %v938_v32 = vsub.f32 %v826_v11, %v860_v33  ;;  %v941_v1 = vsub.f32 %v829_v24, %v870_v17  ;;  %v942_v14 = vsub.f32 %v830_v44, %v870_v17  ;;  %v847_v41 = vld [vmem:[#allocation9 + $0xb0] sm:$0xff]  ;;  %v849_v24 = vld [vmem:[#allocation9 + $0xc0] sm:$0xff] }
 0x308   :  { %1060 = vperm.xlu0 %1299, %v1418_v10   ;;  %v792_v0 = vld [vmem:[#allocation3 + $0x78] sm:$0xff]  ;;  %v791_v30 = vld [vmem:[#allocation3 + $0x70] sm:$0xff]  ;;  %v2145_v59 = vrot.slane %v1145_v47, %v2292_v54  ;;  %v2293_v10 = vsub.s32 1, %v2291_v12  ;;  %v837_v54 = vld [vmem:[#allocation9 + $0x60] sm:$0xff] }
 0x309   :  { %1425 = vrcp.f32 %v792_v0  ;;  %v969_v8 = vmul.f32 1.442695, %v937_v15  ;;  %v971_v13 = vmul.f32 1.442695, %v938_v32  ;;  %v977_v7 = vmul.f32 1.442695, %v941_v1 }
 0x30a   :  { %1427 = vrcp.f32 %v791_v30  ;;  %v2122_v18 = vpop.permute.xlu1 %879  ;;  %v2124_v55 = vpop.permute.xlu0 %874  ;;  %v979_v9 = vmul.f32 1.442695, %v942_v14  ;;  %v2149_v0 = vrot.slane %v1145_v47, %v2293_v10  ;;  %v848_v15 = vld [vmem:[#allocation9 + $0xb8] sm:$0xff]  ;;  %v835_v47 = vld [vmem:[#allocation9 + $0x50] sm:$0xff] }
 0x30b   :  { %v1420_v19 = vpop.eup %1419  ;;  %1429 = vpow2.f32 %v969_v8 }
 0x30c   :  { %v1422_v37 = vpop.eup %1421  ;;  %1100 = vperm.xlu0 %1299, %v1420_v19   ;;  %1431 = vpow2.f32 %v971_v13  ;;  %v943_v19 = vsub.f32 %v831_v38, %v2124_v55 }
 0x30d   :  { %1065 = vperm.xlu1 %1300, %v1422_v37   ;;  %v944_v37 = vsub.f32 %v832_v61, %v2124_v55 }
 0x30e   :  { %v2126_v26 = vpop.permute.xlu1 %889  ;;  %v2128_v52 = vpop.permute.xlu0 %884  ;;  %v981_v8 = vmul.f32 1.442695, %v943_v19 }
 0x30f   :  { %v1424_v28 = vpop.eup %1423 }
 0x310   :  { %1070 = vperm.xlu0 %1299, %v1424_v28  }
 0x312   :  { %v900_v56 = vpop.permute.xlu1 %899  ;;  %v2130_v6 = vpop.permute.xlu0 %894 }
 0x313   :  { %v1426_v34 = vpop.eup %1425  ;;  %v953_v42 = vsub.f32 %v841_v36, %v900_v56  ;;  %v954_v3 = vsub.f32 %v842_v29, %v900_v56 }
 0x314   :  { %v1428_v5 = vpop.eup %1427  ;;  %1110 = vperm.xlu0 %1299, %v1426_v34   ;;  %v833_v34 = vld [vmem:[#allocation9 + $0x40] sm:$0xff] }
 0x315   :  { %1105 = vperm.xlu1 %1300, %v1428_v5   ;;  %v1001_v20 = vmul.f32 1.442695, %v953_v42  ;;  %v1003_v63 = vmul.f32 1.442695, %v954_v3  ;;  %v1430_v31 = vpop.eup %1429  ;;  %v945_v33 = vsub.f32 %v833_v34, %v2122_v18  ;;  %v834_v3 = vld [vmem:[#allocation9 + $0x48] sm:$0xff] }
 0x316   :  { %v910_v62 = vpop.permute.xlu1 %909  ;;  %v905_v51 = vpop.permute.xlu0 %904  ;;  %v946_v2 = vsub.f32 %v834_v3, %v2122_v18 }
 0x317   :  { %1433 = vpow2.f32 %v1001_v20  ;;  %v955_v22 = vsub.f32 %v843_v21, %v905_v51  ;;  %v956_v25 = vsub.f32 %v844_v27, %v905_v51  ;;  %v957_v49 = vsub.f32 %v845_v39, %v910_v62  ;;  %v1432_v30 = vpop.eup %1431 }
 0x318   :  { %1435 = vpow2.f32 %v1003_v63  ;;  %v958_v48 = vsub.f32 %v846_v46, %v910_v62  ;;  %v983_v51 = vmul.f32 1.442695, %v944_v37  ;;  %v985_v20 = vmul.f32 1.442695, %v945_v33  ;;  %v836_v46 = vld [vmem:[#allocation9 + $0x58] sm:$0xff] }
 0x319   :  { %1437 = vpow2.f32 %v973_v4  ;;  %v1005_v58 = vmul.f32 1.442695, %v955_v22  ;;  %v1007_v57 = vmul.f32 1.442695, %v956_v25  ;;  %v1009_v5 = vmul.f32 1.442695, %v957_v49 }
 0x31a   :  { %v2132_v40 = vpop.permute.xlu1 %919  ;;  %v2134_v23 = vpop.permute.xlu0 %914  ;;  %1439 = vpow2.f32 %v975_v35  ;;  %v1011_v56 = vmul.f32 1.442695, %v958_v48  ;;  %v850_v22 = vld [vmem:[#allocation9 + $0xc8] sm:$0xff]  ;;  %v949_v37 = vsub.f32 %v837_v54, %v2126_v26 }
 0x31b   :  { %1441 = vpow2.f32 %v977_v7  ;;  %v959_v32 = vsub.f32 %v847_v41, %v2134_v23  ;;  %v960_v29 = vsub.f32 %v848_v15, %v2134_v23  ;;  %v961_v21 = vsub.f32 %v849_v24, %v2132_v40  ;;  %v852_v15 = vld [vmem:[#allocation9 + $0xd8] sm:$0xff] }
 0x31c   :  { %1443 = vpow2.f32 %v979_v9  ;;  %v987_v7 = vmul.f32 1.442695, %v946_v2  ;;  %v962_v9 = vsub.f32 %v850_v22, %v2132_v40  ;;  %v853_v22 = vld [vmem:[#allocation9 + $0xe0] sm:$0xff] }
 0x31d   :  { %1445 = vpow2.f32 %v1005_v58  ;;  %v1013_v63 = vmul.f32 1.442695, %v959_v32  ;;  %v1015_v23 = vmul.f32 1.442695, %v960_v29  ;;  %v1017_v38 = vmul.f32 1.442695, %v961_v21 }
 0x31e   :  { %v2136_v43 = vpop.permute.xlu1 %929  ;;  %v2141_v50 = vpop.permute.xlu0 %924  ;;  %1447 = vpow2.f32 %v1007_v57  ;;  %v947_v57 = vsub.f32 %v835_v47, %v2128_v52 }
 0x31f   :  { %1449 = vpow2.f32 %v1009_v5  ;;  %v851_v5 = vld [vmem:[#allocation9 + $0xd0] sm:$0xff] }
 0x320   :  { %1451 = vpow2.f32 %v1011_v56  ;;  %v989_v41 = vmul.f32 1.442695, %v947_v57  ;;  %v963_v32 = vsub.f32 %v851_v5, %v2141_v50 }
 0x321   :  { %v1434_v11 = vpop.eup %1433  ;;  %1453 = vpow2.f32 %v981_v8 }
 0x322   :  { %v1436_v55 = vpop.eup %1435  ;;  %v2158_v42 = vpop.permute.xlu0 %934  ;;  %1455 = vpow2.f32 %v983_v51  ;;  %v993_v51 = vmul.f32 1.442695, %v949_v37 }
 0x323   :  { %v1438_v45 = vpop.eup %1437  ;;  %1457 = vpow2.f32 %v985_v20 }
 0x324   :  { %v1440_v14 = vpop.eup %1439  ;;  %1459 = vpow2.f32 %v1013_v63 }
 0x325   :  { %v1442_v27 = vpop.eup %1441  ;;  %1461 = vpow2.f32 %v1015_v23 }
 0x326   :  { %v1444_v25 = vpop.eup %1443  ;;  %1463 = vpow2.f32 %v987_v7  ;;  %v965_v7 = vsub.f32 %v853_v22, %v2136_v43 }
 0x327   :  { %v1446_v39 = vpop.eup %1445  ;;  %1465 = vpow2.f32 %v1017_v38 }
 0x328   :  { %v1448_v48 = vpop.eup %1447 }
 0x329   :  { %v1450_v34 = vpop.eup %1449 }
 0x32a   :  { %v1452_v56 = vpop.eup %1451 }
 0x367   :  { %v1036_v28 = vpop.permute.xlu1 %1035 }
 0x368   :  { %v1113_v53 = vmul.f32 %v1430_v31, %v1036_v28  ;;  %v1114_v17 = vmul.f32 %v1432_v30, %v1036_v28  ;;  %v948_v31 = vsub.f32 %v836_v46, %v2128_v52  ;;  %v1019_v28 = vmul.f32 1.442695, %v962_v9  ;;  %v855_v9 = vld [vmem:[#allocation9 + $0xf0] sm:$0xff]  ;;  %v856_v46 = vld [vmem:[#allocation9 + $0xf8] sm:$0xff] }
 0x369   :  { %v968_v38 = vsub.f32 %v856_v46, %v2158_v42 }
 0x36a   :  { %v1157_v36 = vmul.f32 %v2145_v59, %v1113_v53  ;;  %v1158_v62 = vmul.f32 %v2149_v0, %v1114_v17  ;;  %1467 = vpow2.f32 %v1019_v28 }
 0x36b   :  { %v1076_v13 = vpop.permute.xlu1 %1075  ;;  %1469 = vpow2.f32 %v989_v41 }
 0x36c   :  { %1189 = vst [vmem:[#allocation9] sm:$0xff] %v1157_v36  ;;  %1190 = vst [vmem:[#allocation9 + $0x8] sm:$0xff] %v1158_v62  ;;  %v1129_v60 = vmul.f32 %v1434_v11, %v1076_v13  ;;  %v1130_v16 = vmul.f32 %v1436_v55, %v1076_v13  ;;  %v991_v11 = vmul.f32 1.442695, %v948_v31  ;;  %v838_v62 = vld [vmem:[#allocation9 + $0x68] sm:$0xff]  ;;  %v964_v55 = vsub.f32 %v852_v15, %v2141_v50  ;;  %v1454_v13 = vpop.eup %1453 }
 0x36d   :  { %v950_v3 = vsub.f32 %v838_v62, %v2126_v26  ;;  %v1456_v2 = vpop.eup %1455  ;;  %v854_v31 = vld [vmem:[#allocation9 + $0xe8] sm:$0xff] }
 0x36e   :  { %v1173_v44 = vmul.f32 %v2145_v59, %v1129_v60  ;;  %v1174_v1 = vmul.f32 %v2149_v0, %v1130_v16  ;;  %v839_v60 = vld [vmem:[#allocation9 + $0x70] sm:$0xff]  ;;  %v840_v16 = vld [vmem:[#allocation9 + $0x78] sm:$0xff]  ;;  %1471 = vpow2.f32 %v991_v11  ;;  %v1023_v23 = vmul.f32 1.442695, %v964_v55 }
 0x36f   :  { %v1041_v4 = vpop.permute.xlu0 %1040  ;;  %v951_v20 = vsub.f32 %v839_v60, %v2130_v6  ;;  %1473 = vpow2.f32 %v993_v51  ;;  %v966_v54 = vsub.f32 %v854_v31, %v2136_v43 }
 0x370   :  { %1205 = vst [vmem:[#allocation9 + $0x80] sm:$0xff] %v1173_v44  ;;  %1206 = vst [vmem:[#allocation9 + $0x88] sm:$0xff] %v1174_v1  ;;  %v1115_v18 = vmul.f32 %v1438_v45, %v1041_v4  ;;  %v1116_v35 = vmul.f32 %v1440_v14, %v1041_v4  ;;  %v952_v45 = vsub.f32 %v840_v16, %v2130_v6  ;;  %v1458_v44 = vpop.eup %1457  ;;  %v1021_v1 = vmul.f32 1.442695, %v963_v32 }
 0x371   :  { %v1460_v26 = vpop.eup %1459 }
 0x372   :  { %v1159_v49 = vmul.f32 %v2145_v59, %v1115_v18  ;;  %v1160_v58 = vmul.f32 %v2149_v0, %v1116_v35  ;;  %v1462_v4 = vpop.eup %1461  ;;  %v997_v35 = vmul.f32 1.442695, %v951_v20  ;;  %1475 = vpow2.f32 %v1021_v1 }
 0x373   :  { %v1081_v61 = vpop.permute.xlu0 %1080  ;;  %v1046_v12 = vpop.permute.xlu1 %1045  ;;  %1477 = vpow2.f32 %v1023_v23 }
 0x374   :  { %1191 = vst [vmem:[#allocation9 + $0x10] sm:$0xff] %v1159_v49  ;;  %1192 = vst [vmem:[#allocation9 + $0x18] sm:$0xff] %v1160_v58  ;;  %v1131_v40 = vmul.f32 %v1446_v39, %v1081_v61  ;;  %v1132_v10 = vmul.f32 %v1448_v48, %v1081_v61  ;;  %v1117_v30 = vmul.f32 %v1442_v27, %v1046_v12  ;;  %v995_v27 = vmul.f32 1.442695, %v950_v3  ;;  %v1464_v47 = vpop.eup %1463 }
 0x375   :  { %v1118_v19 = vmul.f32 %v1444_v25, %v1046_v12  ;;  %v999_v25 = vmul.f32 1.442695, %v952_v45  ;;  %v967_v49 = vsub.f32 %v855_v9, %v2158_v42 }
 0x376   :  { %v1175_v53 = vmul.f32 %v2145_v59, %v1131_v40  ;;  %v1176_v52 = vmul.f32 %v2149_v0, %v1132_v10  ;;  %v1161_v17 = vmul.f32 %v2145_v59, %v1117_v30  ;;  %1479 = vpow2.f32 %v995_v27  ;;  %v1466_v30 = vpop.eup %1465 }
 0x377   :  { %v1162_v33 = vmul.f32 %v2149_v0, %v1118_v19  ;;  %v1086_v36 = vpop.permute.xlu1 %1085  ;;  %v1025_v19 = vmul.f32 1.442695, %v965_v7  ;;  %1481 = vpow2.f32 %v997_v35  ;;  %v1029_v5 = vmul.f32 1.442695, %v967_v49 }
 0x378   :  { %1207 = vst [vmem:[#allocation9 + $0x90] sm:$0xff] %v1175_v53  ;;  %1208 = vst [vmem:[#allocation9 + $0x98] sm:$0xff] %v1176_v52  ;;  %v1133_v8 = vmul.f32 %v1450_v34, %v1086_v36  ;;  %v1134_v29 = vmul.f32 %v1452_v56, %v1086_v36  ;;  %v1468_v34 = vpop.eup %1467  ;;  %1483 = vpow2.f32 %v999_v25  ;;  %v1031_v53 = vmul.f32 1.442695, %v968_v38 }
 0x379   :  { %1193 = vst [vmem:[#allocation9 + $0x20] sm:$0xff] %v1161_v17  ;;  %1194 = vst [vmem:[#allocation9 + $0x28] sm:$0xff] %v1162_v33  ;;  %v1470_v17 = vpop.eup %1469  ;;  %v1027_v33 = vmul.f32 1.442695, %v966_v54  ;;  %1485 = vpow2.f32 %v1025_v19 }
 0x37a   :  { %v1177_v50 = vmul.f32 %v2145_v59, %v1133_v8  ;;  %v1178_v24 = vmul.f32 %v2149_v0, %v1134_v29  ;;  %v1472_v56 = vpop.eup %1471  ;;  %1487 = vpow2.f32 %v1029_v5 }
 0x37b   :  { %v1051_v63 = vpop.permute.xlu0 %1050  ;;  %v1474_v62 = vpop.eup %1473  ;;  %1489 = vpow2.f32 %v1031_v53 }
 0x37c   :  { %v1119_v14 = vmul.f32 %v1454_v13, %v1051_v63  ;;  %v1120_v21 = vmul.f32 %v1456_v2, %v1051_v63  ;;  %1209 = vst [vmem:[#allocation9 + $0xa0] sm:$0xff] %v1177_v50  ;;  %1210 = vst [vmem:[#allocation9 + $0xa8] sm:$0xff] %v1178_v24  ;;  %v1476_v55 = vpop.eup %1475  ;;  %1491 = vpow2.f32 %v1027_v33 }
 0x37d   :  { %v1478_v13 = vpop.eup %1477 }
 0x37e   :  { %v1163_v6 = vmul.f32 %v2145_v59, %v1119_v14  ;;  %v1164_v18 = vmul.f32 %v2149_v0, %v1120_v21 }
 0x37f   :  { %v1091_v39 = vpop.permute.xlu0 %1090 }
 0x380   :  { %1195 = vst [vmem:[#allocation9 + $0x30] sm:$0xff] %v1163_v6  ;;  %1196 = vst [vmem:[#allocation9 + $0x38] sm:$0xff] %v1164_v18  ;;  %v1135_v58 = vmul.f32 %v1460_v26, %v1091_v39  ;;  %v1136_v48 = vmul.f32 %v1462_v4, %v1091_v39  ;;  %v1056_v57 = vpop.permute.xlu1 %1055  ;;  %v1480_v51 = vpop.eup %1479 }
 0x381   :  { %v1121_v61 = vmul.f32 %v1458_v44, %v1056_v57  ;;  %v1122_v12 = vmul.f32 %v1464_v47, %v1056_v57  ;;  %v1482_v50 = vpop.eup %1481 }
 0x382   :  { %v1179_v40 = vmul.f32 %v2145_v59, %v1135_v58  ;;  %v1180_v10 = vmul.f32 %v2149_v0, %v1136_v48  ;;  %v1484_v44 = vpop.eup %1483 }
 0x383   :  { %v1165_v37 = vmul.f32 %v2145_v59, %v1121_v61  ;;  %v1166_v28 = vmul.f32 %v2149_v0, %v1122_v12  ;;  %v1486_v4 = vpop.eup %1485 }
 0x384   :  { %1211 = vst [vmem:[#allocation9 + $0xb0] sm:$0xff] %v1179_v40  ;;  %1212 = vst [vmem:[#allocation9 + $0xb8] sm:$0xff] %v1180_v10  ;;  %v1096_v42 = vpop.permute.xlu1 %1095  ;;  %v1488_v27 = vpop.eup %1487 }
 0x385   :  { %1197 = vst [vmem:[#allocation9 + $0x40] sm:$0xff] %v1165_v37  ;;  %1198 = vst [vmem:[#allocation9 + $0x48] sm:$0xff] %v1166_v28  ;;  %v1137_v43 = vmul.f32 %v1466_v30, %v1096_v42  ;;  %v1138_v52 = vmul.f32 %v1468_v34, %v1096_v42  ;;  %v1490_v18 = vpop.eup %1489 }
 0x386   :  { %v1492_v25 = vpop.eup %1491 }
 0x387   :  { %v1181_v41 = vmul.f32 %v2145_v59, %v1137_v43  ;;  %v1182_v11 = vmul.f32 %v2149_v0, %v1138_v52  ;;  %v1061_v15 = vpop.permute.xlu0 %1060 }
 0x388   :  { %v1123_v32 = vmul.f32 %v1470_v17, %v1061_v15  ;;  %v1124_v36 = vmul.f32 %v1472_v56, %v1061_v15 }
 0x389   :  { %1213 = vst [vmem:[#allocation9 + $0xc0] sm:$0xff] %v1181_v41  ;;  %1214 = vst [vmem:[#allocation9 + $0xc8] sm:$0xff] %v1182_v11 }
 0x38a   :  { %v1167_v8 = vmul.f32 %v2145_v59, %v1123_v32  ;;  %v1168_v29 = vmul.f32 %v2149_v0, %v1124_v36 }
 0x38b   :  { %v1101_v3 = vpop.permute.xlu0 %1100 }
 0x38c   :  { %1199 = vst [vmem:[#allocation9 + $0x50] sm:$0xff] %v1167_v8  ;;  %1200 = vst [vmem:[#allocation9 + $0x58] sm:$0xff] %v1168_v29  ;;  %v1139_v60 = vmul.f32 %v1476_v55, %v1101_v3  ;;  %v1140_v16 = vmul.f32 %v1478_v13, %v1101_v3  ;;  %v1066_v2 = vpop.permute.xlu1 %1065 }
 0x38d   :  { %v1125_v20 = vmul.f32 %v1474_v62, %v1066_v2  ;;  %v1126_v45 = vmul.f32 %v1480_v51, %v1066_v2 }
 0x38e   :  { %v1183_v24 = vmul.f32 %v2145_v59, %v1139_v60  ;;  %v1184_v63 = vmul.f32 %v2149_v0, %v1140_v16 }
 0x38f   :  { %v1169_v1 = vmul.f32 %v2145_v59, %v1125_v20  ;;  %v1170_v14 = vmul.f32 %v2149_v0, %v1126_v45  ;;  %v1071_v21 = vpop.permute.xlu0 %1070 }
 0x390   :  { %1215 = vst [vmem:[#allocation9 + $0xd0] sm:$0xff] %v1183_v24  ;;  %1216 = vst [vmem:[#allocation9 + $0xd8] sm:$0xff] %v1184_v63  ;;  %v1127_v26 = vmul.f32 %v1482_v50, %v1071_v21  ;;  %v1128_v23 = vmul.f32 %v1484_v44, %v1071_v21 }
 0x391   :  { %1201 = vst [vmem:[#allocation9 + $0x60] sm:$0xff] %v1169_v1  ;;  %1202 = vst [vmem:[#allocation9 + $0x68] sm:$0xff] %v1170_v14 }
 0x392   :  { %v1171_v22 = vmul.f32 %v2145_v59, %v1127_v26  ;;  %v1172_v6 = vmul.f32 %v2149_v0, %v1128_v23 }
 0x393   :  { %v1111_v35 = vpop.permute.xlu0 %1110 }
 0x394   :  { %1203 = vst [vmem:[#allocation9 + $0x70] sm:$0xff] %v1171_v22  ;;  %1204 = vst [vmem:[#allocation9 + $0x78] sm:$0xff] %v1172_v6  ;;  %v1143_v7 = vmul.f32 %v1488_v27, %v1111_v35  ;;  %v1144_v9 = vmul.f32 %v1490_v18, %v1111_v35  ;;  %v1106_v39 = vpop.permute.xlu1 %1105 }
 0x395   :  { %v1141_v47 = vmul.f32 %v1486_v4, %v1106_v39  ;;  %v1142_v46 = vmul.f32 %v1492_v25, %v1106_v39 }
 0x396   :  { %v1187_v49 = vmul.f32 %v2145_v59, %v1143_v7  ;;  %v1188_v58 = vmul.f32 %v2149_v0, %v1144_v9 }
 0x397   :  { %v1185_v48 = vmul.f32 %v2145_v59, %v1141_v47  ;;  %v1186_v57 = vmul.f32 %v2149_v0, %v1142_v46 }
 0x398   :  { %1219 = vst [vmem:[#allocation9 + $0xf0] sm:$0xff] %v1187_v49  ;;  %1220 = vst [vmem:[#allocation9 + $0xf8] sm:$0xff] %v1188_v58 }
 0x399   :  { %1217 = vst [vmem:[#allocation9 + $0xe0] sm:$0xff] %v1185_v48  ;;  %1218 = vst [vmem:[#allocation9 + $0xe8] sm:$0xff] %v1186_v57 }
 0x39a   :  { %1548 = shalt.err (!%p1545_p6)
}
 0x39b   :  { %s1549_s22 = scalar_lea.hbm %s2224_s4, 4096 }
 0x39c   :  { %p1550_p7 = scmp.ne.s32.totalorder %s2224_s4, %s1549_s22  ;;  %p1553_p8 = scmp.lt.u32.totalorder %s1549_s22, %s2224_s4 }
 0x39e   :  { %p1555_p9 = pnand %p1553_p8, %p1550_p7 }
 0x3a0   :  { %1558 = shalt.err (!%p1555_p9)
}
 0x3a1   :  { %1232 = dma.vmem_to_hbm [thread:$0]  %s1227_s18, 4096, %s2224_s4, [#allocation6], %s1569_s0, %s1569_s0, %s1570_s13  }
 0x3a2   :  { %1563 = dma.done.wait [#allocation6], 4096  }
 0x3a3   :  { %1564 = vsyncadd [#allocation6], 4294963200 }
 0x3a4   :  { %1236 = vsyncpa [#allocation5], 1 }
 0x3a5   :  { %1237 = vsyncpa [#allocation8], 1 }
 0x3a6   :  { %1238 = vsyncpa [#allocation6], 1 }

</bundles_post_ra>
